<compile_context>
chip_gen: v6e
topology: v6e:2x2x1
jax: 0.10.0
libtpu: 0.0.40
codegen_flags: <defaults>
</compile_context>

<pallas_src>
import jax
import jax.numpy as jnp
from jax.experimental import pallas as pl
from jax.experimental.pallas import tpu as pltpu  # noqa: F401  (kept for TPU-specific knobs)

MXU_DTYPE = jnp.bfloat16   # MXU operand dtype; accumulation/elementwise stay f32
GATE_LANES = 128           # lane-tile width reserved per gate block


# ----------------------------------------------------------------------------
# Fused kernel: num_layers stacked GRU layers (wavefronted) + Linear-ReLU-
# Linear-ReLU-Linear classifier on the last timestep of the last layer.
# PyTorch gate order (r, z, n):
#   r = sigmoid(x W_ir^T + b_ir + h W_hr^T + b_hr)
#   z = sigmoid(x W_iz^T + b_iz + h W_hz^T + b_hz)
#   n = tanh  (x W_in^T + b_in + r * (h W_hn^T + b_hn))
#   h' = (1 - z) * n + z * h     (rewritten as n + z*(h - n))
# ----------------------------------------------------------------------------
def make_gru_v3_kernel(num_layers, S, B, Bp, H, G):
    L = num_layers
    blk = 4 * G  # per-layer column block: [r | z | n_x | n_h], each G lanes wide

    def kernel(x_ref, h0_ref, wih0_ref, wc_ref, bx_ref,
               w1_ref, b1_ref, w2_ref, b2_ref, w3_ref, b3_ref, o_ref):
        f32 = jnp.float32

        def sigmoid(v):
            # EUP-only form (tanh slot); avoids a VPU Newton-divide on the chain
            return 0.5 * jnp.tanh(0.5 * v) + 0.5

        # ---- Hoisted, time-parallel layer-0 input projection: ONE MXU matmul
        # over all S timesteps; gate blocks land at lane offsets 0/G/2G/3G and
        # all input-side + b_hr/b_hz/b_hn biases are pre-folded into bx_ref[0].
        xp = jnp.dot(x_ref[...], wih0_ref[...],
                     preferred_element_type=f32)            # (S*Bp, 4G)
        xp = xp + bx_ref[0]                                  # bias fold, off-chain

        # ---- Bias broadcasts hoisted out of the unrolled wave loop (JAX does
        # not CSE broadcast_in_dim; the loop is fully unrolled).
        bx_b = [jnp.broadcast_to(bx_ref[l], (B, blk)) for l in range(1, L)]

        wc = wc_ref[...]                                     # (L*H, L*4G) bf16
        hs = [h0_ref[l].astype(f32) for l in range(L)]       # per-layer hidden

        # ---- Wavefront over layers: wave step w runs layer l at timestep
        # t = w - l, so layer l+1's step t overlaps layer l's step t+1.
        # Total S + L - 1 dependent wave steps, one stacked MXU matmul each.
        for w in range(S + L - 1):
            hcat = hs[0] if L == 1 else jnp.concatenate(hs, axis=1)   # (B, L*H)
            g = jnp.dot(hcat.astype(wc.dtype), wc,
                        preferred_element_type=f32)                   # (B, L*4G)
            for l in range(L):
                t = w - l
                if not (0 <= t < S):
                    continue                     # layer idle at this wave (static)
                c0 = l * blk
                # layer 0: add the pre-computed input projection of timestep t
                # layer>0: input projection (from h_{l-1}) is inside g already;
                #          add the folded bias row.
                pre = g[:, c0:c0 + blk] + (xp[t * Bp:t * Bp + B, :] if l == 0
                                           else bx_b[l - 1])          # (B, 4G)
                r = sigmoid(pre[:, 0:H])                              # lane off 0
                z = sigmoid(pre[:, G:G + H])                          # lane off 128
                n = jnp.tanh(pre[:, 2 * G:2 * G + H]                  # x-part + b_in
                             + r * pre[:, 3 * G:3 * G + H])           # r*(h W_hn+b_hn)
                hs[l] = n + z * (hs[l] - n)                           # (1-z)n + z h
        # TODO(synk): nn.GRU inter-layer dropout is training-mode only; omitted
        # here (inference semantics).

        # ---- classifier on output[:, -1, :] == final hidden of last layer
        a = jnp.maximum(
            jnp.dot(hs[-1], w1_ref[...], preferred_element_type=f32) + b1_ref[...],
            0.0)
        a = jnp.maximum(
            jnp.dot(a, w2_ref[...], preferred_element_type=f32) + b2_ref[...],
            0.0)
        o_ref[...] = (
            jnp.dot(a, w3_ref[...], preferred_element_type=f32) + b3_ref[...]
        ).astype(o_ref.dtype)

    return kernel


# ----------------------------------------------------------------------------
# One-time parameter preprocessing (all transposes, lane padding, gate
# stacking and bias folding hoisted out of the forward pass).
# ----------------------------------------------------------------------------
def prepare_params(raw, input_sz, hidden, num_layers):
    H, L, G = hidden, num_layers, GATE_LANES
    assert H <= G, "gate padding scheme assumes hidden <= 128"
    blk = 4 * G
    K_in = ((input_sz + G - 1) // G) * G       # 115 -> 128

    # Layer-0 input projection weight, padded K and lane-padded gates.
    wih0 = jnp.zeros((K_in, blk), jnp.float32)
    w_ih0 = raw["w_ih_0"]                       # (3H, input_sz), gate order r,z,n
    for g in range(3):                          # r->0, z->G, n_x->2G (n_h slot = 0)
        wih0 = wih0.at[:input_sz, g * G:g * G + H].set(
            jnp.transpose(w_ih0[g * H:(g + 1) * H, :]))

    # Stacked recurrent weight: rows = [h_0 | h_1 | ...],
    # cols = per-layer 4G blocks [r | z | n_x | n_h].
    wc = jnp.zeros((L * H, L * blk), jnp.float32)
    for l in range(L):
        c0 = l * blk
        w_hh = raw[f"w_hh_{l}"]                 # (3H, H)
        for g in range(3):                      # hidden side: r->0, z->G, n_h->3G
            col = c0 + (g if g < 2 else 3) * G
            wc = wc.at[l * H:(l + 1) * H, col:col + H].set(
                jnp.transpose(w_hh[g * H:(g + 1) * H, :]))
        if l > 0:                               # input side (= h_{l-1}): r,z,n_x
            w_ih = raw[f"w_ih_{l}"]             # (3H, H)
            for g in range(3):
                col = c0 + g * G
                wc = wc.at[(l - 1) * H:l * H, col:col + H].set(
                    jnp.transpose(w_ih[g * H:(g + 1) * H, :]))

    # Per-layer folded, lane-padded bias rows:
    #   [b_ir+b_hr | b_iz+b_hz | b_in | b_hn] at lane offsets 0/G/2G/3G.
    bxs = jnp.zeros((L, 1, blk), jnp.float32)
    for l in range(L):
        b_ih, b_hh = raw[f"b_ih_{l}"], raw[f"b_hh_{l}"]
        bxs = bxs.at[l, 0, 0:H].set(b_ih[0:H] + b_hh[0:H])
        bxs = bxs.at[l, 0, G:G + H].set(b_ih[H:2 * H] + b_hh[H:2 * H])
        bxs = bxs.at[l, 0, 2 * G:2 * G + H].set(b_ih[2 * H:3 * H])
        bxs = bxs.at[l, 0, 3 * G:3 * G + H].set(b_hh[2 * H:3 * H])

    return {
        "wih0": wih0.astype(MXU_DTYPE),
        "wc": wc.astype(MXU_DTYPE),
        "bxs": bxs,
        "w1": jnp.transpose(raw["fc1_w"]), "b1": raw["fc1_b"].reshape(1, -1),
        "w2": jnp.transpose(raw["fc2_w"]), "b2": raw["fc2_b"].reshape(1, -1),
        "w3": jnp.transpose(raw["fc3_w"]), "b3": raw["fc3_b"].reshape(1, -1),
    }


# ----------------------------------------------------------------------------
# GRU_V3.forward equivalent.  Returns raw fc3 logits (the PyTorch classifier
# Sequential has no softmax), shape (B, 2).
# ----------------------------------------------------------------------------
def gru_v3_forward(prep, data, labels, h0_all):
    del labels  # unused in the reference forward
    B, S, I = data.shape
    H = prep["w1"].shape[0]
    L = prep["bxs"].shape[0]
    K_in = prep["wih0"].shape[0]
    G = prep["wih0"].shape[1] // 4
    Bp = ((B + 7) // 8) * 8     # pad batch to a sublane tile -> aligned t-slices

    # batch-first -> time-major; pad batch to Bp and features to K_in (zeros),
    # flatten so timestep t occupies rows [t*Bp, t*Bp+B); cast MXU operand dtype.
    x = jnp.transpose(data, (1, 0, 2))                      # (S, B, I)
    x = jnp.pad(x, ((0, 0), (0, Bp - B), (0, K_in - I)))    # (S, Bp, K_in)
    x = x.reshape(S * Bp, K_in).astype(MXU_DTYPE)

    return pl.pallas_call(
        make_gru_v3_kernel(L, S, B, Bp, H, G),
        out_shape=jax.ShapeDtypeStruct((B, 2), jnp.float32),
    )(x, h0_all, prep["wih0"], prep["wc"], prep["bxs"],
      prep["w1"], prep["b1"], prep["w2"], prep["b2"], prep["w3"], prep["b3"])


# ----------------------------------------------------------------------------
# Parameter init (deterministic; mirrors PyTorch init schemes approximately),
# kept in raw PyTorch layouts; prepare_params() does the one-time repacking.
# ----------------------------------------------------------------------------
def init_params(key, input_sz, hidden, num_layers):
    params = {}
    keys = iter(jax.random.split(key, 4 * num_layers + 6))
    bound = 1.0 / jnp.sqrt(hidden)
    for l in range(num_layers):
        in_l = input_sz if l == 0 else hidden
        params[f"w_ih_{l}"] = jax.random.uniform(
            next(keys), (3 * hidden, in_l), jnp.float32, -bound, bound)
        params[f"w_hh_{l}"] = jax.random.uniform(
            next(keys), (3 * hidden, hidden), jnp.float32, -bound, bound)
        params[f"b_ih_{l}"] = jax.random.uniform(
            next(keys), (3 * hidden,), jnp.float32, -bound, bound)
        params[f"b_hh_{l}"] = jax.random.uniform(
            next(keys), (3 * hidden,), jnp.float32, -bound, bound)

    def xavier_normal(k, fan_out, fan_in):
        std = jnp.sqrt(2.0 / (fan_in + fan_out))
        return std * jax.random.normal(k, (fan_out, fan_in), jnp.float32)

    h2, h4 = hidden // 2, hidden // 4
    params["fc1_w"] = xavier_normal(next(keys), h2, hidden)
    params["fc1_b"] = jax.random.uniform(
        next(keys), (h2,), jnp.float32, -1.0 / jnp.sqrt(hidden), 1.0 / jnp.sqrt(hidden))
    params["fc2_w"] = xavier_normal(next(keys), h4, h2)
    params["fc2_b"] = jax.random.uniform(
        next(keys), (h4,), jnp.float32, -1.0 / jnp.sqrt(h2), 1.0 / jnp.sqrt(h2))
    params["fc3_w"] = xavier_normal(next(keys), 2, h4)
    params["fc3_b"] = jax.random.uniform(
        next(keys), (2,), jnp.float32, -1.0 / jnp.sqrt(h4), 1.0 / jnp.sqrt(h4))
    return params


if __name__ == "__main__":
    batch_size = 2
    seq_len = 8
    hidden = 32
    num_layers = 2
    input_sz = 57 * 2 + 1  # 115

    key = jax.random.PRNGKey(0)
    k_param, k_data, k_hidden, k_labels = jax.random.split(key, 4)

    raw_params = init_params(k_param, input_sz, hidden, num_layers)
    prep = prepare_params(raw_params, input_sz, hidden, num_layers)

    data = jax.random.normal(k_data, (batch_size, seq_len, input_sz), jnp.float32)
    labels = jax.random.randint(k_labels, (batch_size,), 0, 2)
    # torch.randn(layers, batch, hidden) equivalent (deterministic here)
    h0_all = jax.random.normal(
        k_hidden, (num_layers, batch_size, hidden), jnp.float32)

    fwd = jax.jit(gru_v3_forward)
    logits = fwd(prep, data, labels, h0_all)   # raw fc3 logits, as in the reference
    logits = jax.block_until_ready(logits)
    assert logits.shape == (batch_size, 2)
    print("KERNEL_OK")
</pallas_src>

<mosaic_0001>
module attributes {stable_mosaic.version = 11 : i64} {
  func.func @kernel(%arg0: memref<64x128xbf16, #tpu.memory_space<vmem>>, %arg1: memref<2x2x32xf32, #tpu.memory_space<vmem>>, %arg2: memref<128x512xbf16, #tpu.memory_space<vmem>>, %arg3: memref<64x1024xbf16, #tpu.memory_space<vmem>>, %arg4: memref<2x1x512xf32, #tpu.memory_space<vmem>>, %arg5: memref<32x16xf32, #tpu.memory_space<vmem>>, %arg6: memref<1x16xf32, #tpu.memory_space<vmem>>, %arg7: memref<16x8xf32, #tpu.memory_space<vmem>>, %arg8: memref<1x8xf32, #tpu.memory_space<vmem>>, %arg9: memref<8x2xf32, #tpu.memory_space<vmem>>, %arg10: memref<1x2xf32, #tpu.memory_space<vmem>>, %arg11: memref<2x2xf32, #tpu.memory_space<vmem>>) attributes {dimension_semantics = [], scalar_prefetch = 0 : i64, scratch_operands = 0 : i64, tpu.core_type = #tpu.core_type<tc>} {
    %c0 = arith.constant 0 : index
    %c0_0 = arith.constant 0 : index
    %0 = vector.load %arg0[%c0, %c0_0] : memref<64x128xbf16, #tpu.memory_space<vmem>>, vector<64x128xbf16>
    %c0_1 = arith.constant 0 : index
    %c0_2 = arith.constant 0 : index
    %1 = vector.load %arg2[%c0_1, %c0_2] : memref<128x512xbf16, #tpu.memory_space<vmem>>, vector<128x512xbf16>
    %cst = arith.constant dense<0.000000e+00> : vector<64x512xf32>
    %2 = tpu.matmul %0, %1, %cst {dimension_numbers = #tpu.dot_dimension_numbers<[1], [0], [0], [1], [0, 0, 1, 1], [], []>} : vector<64x128xbf16>, vector<128x512xbf16>, vector<64x512xf32> -> vector<64x512xf32>
    %c0_3 = arith.constant 0 : index
    %c0_4 = arith.constant 0 : index
    %c0_5 = arith.constant 0 : index
    %3 = vector.load %arg4[%c0_3, %c0_4, %c0_5] : memref<2x1x512xf32, #tpu.memory_space<vmem>>, vector<1x1x512xf32>
    %4 = vector.shape_cast %3 : vector<1x1x512xf32> to vector<1x512xf32>
    %5 = vector.broadcast %4 : vector<1x512xf32> to vector<64x512xf32>
    %6 = arith.addf %2, %5 : vector<64x512xf32>
    %c1 = arith.constant 1 : index
    %c0_6 = arith.constant 0 : index
    %c0_7 = arith.constant 0 : index
    %7 = vector.load %arg4[%c1, %c0_6, %c0_7] : memref<2x1x512xf32, #tpu.memory_space<vmem>>, vector<1x1x512xf32>
    %8 = vector.shape_cast %7 : vector<1x1x512xf32> to vector<1x512xf32>
    %9 = vector.shape_cast %8 : vector<1x512xf32> to vector<1x512xf32>
    %10 = vector.broadcast %9 : vector<1x512xf32> to vector<2x512xf32>
    %c0_8 = arith.constant 0 : index
    %c0_9 = arith.constant 0 : index
    %11 = vector.load %arg3[%c0_8, %c0_9] : memref<64x1024xbf16, #tpu.memory_space<vmem>>, vector<64x1024xbf16>
    %c0_10 = arith.constant 0 : index
    %c0_11 = arith.constant 0 : index
    %c0_12 = arith.constant 0 : index
    %12 = vector.load %arg1[%c0_10, %c0_11, %c0_12] : memref<2x2x32xf32, #tpu.memory_space<vmem>>, vector<1x2x32xf32>
    %13 = vector.shape_cast %12 : vector<1x2x32xf32> to vector<2x32xf32>
    %c1_13 = arith.constant 1 : index
    %c0_14 = arith.constant 0 : index
    %c0_15 = arith.constant 0 : index
    %14 = vector.load %arg1[%c1_13, %c0_14, %c0_15] : memref<2x2x32xf32, #tpu.memory_space<vmem>>, vector<1x2x32xf32>
    %15 = vector.shape_cast %14 : vector<1x2x32xf32> to vector<2x32xf32>
    %16 = tpu.concatenate %13, %15 in 1 : vector<2x32xf32>, vector<2x32xf32> -> vector<2x64xf32>
    %17 = arith.truncf %16 : vector<2x64xf32> to vector<2x64xbf16>
    %cst_16 = arith.constant dense<0.000000e+00> : vector<2x1024xf32>
    %18 = tpu.matmul %17, %11, %cst_16 {dimension_numbers = #tpu.dot_dimension_numbers<[1], [0], [0], [1], [0, 0, 1, 1], [], []>} : vector<2x64xbf16>, vector<64x1024xbf16>, vector<2x1024xf32> -> vector<2x1024xf32>
    %19 = vector.extract_strided_slice %18 {offsets = [0, 0], sizes = [2, 512], strides = [1, 1]} : vector<2x1024xf32> to vector<2x512xf32>
    %20 = vector.extract_strided_slice %6 {offsets = [0, 0], sizes = [2, 512], strides = [1, 1]} : vector<64x512xf32> to vector<2x512xf32>
    %21 = arith.addf %19, %20 : vector<2x512xf32>
    %22 = vector.extract_strided_slice %21 {offsets = [0, 0], sizes = [2, 32], strides = [1, 1]} : vector<2x512xf32> to vector<2x32xf32>
    %cst_17 = arith.constant 5.000000e-01 : f32
    %23 = vector.broadcast %cst_17 : f32 to vector<2x32xf32>
    %24 = arith.mulf %23, %22 : vector<2x32xf32>
    %25 = math.tanh %24 : vector<2x32xf32>
    %cst_18 = arith.constant 5.000000e-01 : f32
    %26 = vector.broadcast %cst_18 : f32 to vector<2x32xf32>
    %27 = arith.mulf %26, %25 : vector<2x32xf32>
    %cst_19 = arith.constant 5.000000e-01 : f32
    %28 = vector.broadcast %cst_19 : f32 to vector<2x32xf32>
    %29 = arith.addf %27, %28 : vector<2x32xf32>
    %30 = vector.extract_strided_slice %21 {offsets = [0, 128], sizes = [2, 32], strides = [1, 1]} : vector<2x512xf32> to vector<2x32xf32>
    %cst_20 = arith.constant 5.000000e-01 : f32
    %31 = vector.broadcast %cst_20 : f32 to vector<2x32xf32>
    %32 = arith.mulf %31, %30 : vector<2x32xf32>
    %33 = math.tanh %32 : vector<2x32xf32>
    %cst_21 = arith.constant 5.000000e-01 : f32
    %34 = vector.broadcast %cst_21 : f32 to vector<2x32xf32>
    %35 = arith.mulf %34, %33 : vector<2x32xf32>
    %cst_22 = arith.constant 5.000000e-01 : f32
    %36 = vector.broadcast %cst_22 : f32 to vector<2x32xf32>
    %37 = arith.addf %35, %36 : vector<2x32xf32>
    %38 = vector.extract_strided_slice %21 {offsets = [0, 256], sizes = [2, 32], strides = [1, 1]} : vector<2x512xf32> to vector<2x32xf32>
    %39 = vector.extract_strided_slice %21 {offsets = [0, 384], sizes = [2, 32], strides = [1, 1]} : vector<2x512xf32> to vector<2x32xf32>
    %40 = arith.mulf %29, %39 : vector<2x32xf32>
    %41 = arith.addf %38, %40 : vector<2x32xf32>
    %42 = math.tanh %41 : vector<2x32xf32>
    %43 = arith.subf %13, %42 : vector<2x32xf32>
    %44 = arith.mulf %37, %43 : vector<2x32xf32>
    %45 = arith.addf %42, %44 : vector<2x32xf32>
    %46 = tpu.concatenate %45, %15 in 1 : vector<2x32xf32>, vector<2x32xf32> -> vector<2x64xf32>
    %47 = arith.truncf %46 : vector<2x64xf32> to vector<2x64xbf16>
    %cst_23 = arith.constant dense<0.000000e+00> : vector<2x1024xf32>
    %48 = tpu.matmul %47, %11, %cst_23 {dimension_numbers = #tpu.dot_dimension_numbers<[1], [0], [0], [1], [0, 0, 1, 1], [], []>} : vector<2x64xbf16>, vector<64x1024xbf16>, vector<2x1024xf32> -> vector<2x1024xf32>
    %49 = vector.extract_strided_slice %48 {offsets = [0, 0], sizes = [2, 512], strides = [1, 1]} : vector<2x1024xf32> to vector<2x512xf32>
    %50 = vector.extract_strided_slice %6 {offsets = [8, 0], sizes = [2, 512], strides = [1, 1]} : vector<64x512xf32> to vector<2x512xf32>
    %51 = arith.addf %49, %50 : vector<2x512xf32>
    %52 = vector.extract_strided_slice %51 {offsets = [0, 0], sizes = [2, 32], strides = [1, 1]} : vector<2x512xf32> to vector<2x32xf32>
    %cst_24 = arith.constant 5.000000e-01 : f32
    %53 = vector.broadcast %cst_24 : f32 to vector<2x32xf32>
    %54 = arith.mulf %53, %52 : vector<2x32xf32>
    %55 = math.tanh %54 : vector<2x32xf32>
    %cst_25 = arith.constant 5.000000e-01 : f32
    %56 = vector.broadcast %cst_25 : f32 to vector<2x32xf32>
    %57 = arith.mulf %56, %55 : vector<2x32xf32>
    %cst_26 = arith.constant 5.000000e-01 : f32
    %58 = vector.broadcast %cst_26 : f32 to vector<2x32xf32>
    %59 = arith.addf %57, %58 : vector<2x32xf32>
    %60 = vector.extract_strided_slice %51 {offsets = [0, 128], sizes = [2, 32], strides = [1, 1]} : vector<2x512xf32> to vector<2x32xf32>
    %cst_27 = arith.constant 5.000000e-01 : f32
    %61 = vector.broadcast %cst_27 : f32 to vector<2x32xf32>
    %62 = arith.mulf %61, %60 : vector<2x32xf32>
    %63 = math.tanh %62 : vector<2x32xf32>
    %cst_28 = arith.constant 5.000000e-01 : f32
    %64 = vector.broadcast %cst_28 : f32 to vector<2x32xf32>
    %65 = arith.mulf %64, %63 : vector<2x32xf32>
    %cst_29 = arith.constant 5.000000e-01 : f32
    %66 = vector.broadcast %cst_29 : f32 to vector<2x32xf32>
    %67 = arith.addf %65, %66 : vector<2x32xf32>
    %68 = vector.extract_strided_slice %51 {offsets = [0, 256], sizes = [2, 32], strides = [1, 1]} : vector<2x512xf32> to vector<2x32xf32>
    %69 = vector.extract_strided_slice %51 {offsets = [0, 384], sizes = [2, 32], strides = [1, 1]} : vector<2x512xf32> to vector<2x32xf32>
    %70 = arith.mulf %59, %69 : vector<2x32xf32>
    %71 = arith.addf %68, %70 : vector<2x32xf32>
    %72 = math.tanh %71 : vector<2x32xf32>
    %73 = arith.subf %45, %72 : vector<2x32xf32>
    %74 = arith.mulf %67, %73 : vector<2x32xf32>
    %75 = arith.addf %72, %74 : vector<2x32xf32>
    %76 = vector.extract_strided_slice %48 {offsets = [0, 512], sizes = [2, 512], strides = [1, 1]} : vector<2x1024xf32> to vector<2x512xf32>
    %77 = arith.addf %76, %10 : vector<2x512xf32>
    %78 = vector.extract_strided_slice %77 {offsets = [0, 0], sizes = [2, 32], strides = [1, 1]} : vector<2x512xf32> to vector<2x32xf32>
    %cst_30 = arith.constant 5.000000e-01 : f32
    %79 = vector.broadcast %cst_30 : f32 to vector<2x32xf32>
    %80 = arith.mulf %79, %78 : vector<2x32xf32>
    %81 = math.tanh %80 : vector<2x32xf32>
    %cst_31 = arith.constant 5.000000e-01 : f32
    %82 = vector.broadcast %cst_31 : f32 to vector<2x32xf32>
    %83 = arith.mulf %82, %81 : vector<2x32xf32>
    %cst_32 = arith.constant 5.000000e-01 : f32
    %84 = vector.broadcast %cst_32 : f32 to vector<2x32xf32>
    %85 = arith.addf %83, %84 : vector<2x32xf32>
    %86 = vector.extract_strided_slice %77 {offsets = [0, 128], sizes = [2, 32], strides = [1, 1]} : vector<2x512xf32> to vector<2x32xf32>
    %cst_33 = arith.constant 5.000000e-01 : f32
    %87 = vector.broadcast %cst_33 : f32 to vector<2x32xf32>
    %88 = arith.mulf %87, %86 : vector<2x32xf32>
    %89 = math.tanh %88 : vector<2x32xf32>
    %cst_34 = arith.constant 5.000000e-01 : f32
    %90 = vector.broadcast %cst_34 : f32 to vector<2x32xf32>
    %91 = arith.mulf %90, %89 : vector<2x32xf32>
    %cst_35 = arith.constant 5.000000e-01 : f32
    %92 = vector.broadcast %cst_35 : f32 to vector<2x32xf32>
    %93 = arith.addf %91, %92 : vector<2x32xf32>
    %94 = vector.extract_strided_slice %77 {offsets = [0, 256], sizes = [2, 32], strides = [1, 1]} : vector<2x512xf32> to vector<2x32xf32>
    %95 = vector.extract_strided_slice %77 {offsets = [0, 384], sizes = [2, 32], strides = [1, 1]} : vector<2x512xf32> to vector<2x32xf32>
    %96 = arith.mulf %85, %95 : vector<2x32xf32>
    %97 = arith.addf %94, %96 : vector<2x32xf32>
    %98 = math.tanh %97 : vector<2x32xf32>
    %99 = arith.subf %15, %98 : vector<2x32xf32>
    %100 = arith.mulf %93, %99 : vector<2x32xf32>
    %101 = arith.addf %98, %100 : vector<2x32xf32>
    %102 = tpu.concatenate %75, %101 in 1 : vector<2x32xf32>, vector<2x32xf32> -> vector<2x64xf32>
    %103 = arith.truncf %102 : vector<2x64xf32> to vector<2x64xbf16>
    %cst_36 = arith.constant dense<0.000000e+00> : vector<2x1024xf32>
    %104 = tpu.matmul %103, %11, %cst_36 {dimension_numbers = #tpu.dot_dimension_numbers<[1], [0], [0], [1], [0, 0, 1, 1], [], []>} : vector<2x64xbf16>, vector<64x1024xbf16>, vector<2x1024xf32> -> vector<2x1024xf32>
    %105 = vector.extract_strided_slice %104 {offsets = [0, 0], sizes = [2, 512], strides = [1, 1]} : vector<2x1024xf32> to vector<2x512xf32>
    %106 = vector.extract_strided_slice %6 {offsets = [16, 0], sizes = [2, 512], strides = [1, 1]} : vector<64x512xf32> to vector<2x512xf32>
    %107 = arith.addf %105, %106 : vector<2x512xf32>
    %108 = vector.extract_strided_slice %107 {offsets = [0, 0], sizes = [2, 32], strides = [1, 1]} : vector<2x512xf32> to vector<2x32xf32>
    %cst_37 = arith.constant 5.000000e-01 : f32
    %109 = vector.broadcast %cst_37 : f32 to vector<2x32xf32>
    %110 = arith.mulf %109, %108 : vector<2x32xf32>
    %111 = math.tanh %110 : vector<2x32xf32>
    %cst_38 = arith.constant 5.000000e-01 : f32
    %112 = vector.broadcast %cst_38 : f32 to vector<2x32xf32>
    %113 = arith.mulf %112, %111 : vector<2x32xf32>
    %cst_39 = arith.constant 5.000000e-01 : f32
    %114 = vector.broadcast %cst_39 : f32 to vector<2x32xf32>
    %115 = arith.addf %113, %114 : vector<2x32xf32>
    %116 = vector.extract_strided_slice %107 {offsets = [0, 128], sizes = [2, 32], strides = [1, 1]} : vector<2x512xf32> to vector<2x32xf32>
    %cst_40 = arith.constant 5.000000e-01 : f32
    %117 = vector.broadcast %cst_40 : f32 to vector<2x32xf32>
    %118 = arith.mulf %117, %116 : vector<2x32xf32>
    %119 = math.tanh %118 : vector<2x32xf32>
    %cst_41 = arith.constant 5.000000e-01 : f32
    %120 = vector.broadcast %cst_41 : f32 to vector<2x32xf32>
    %121 = arith.mulf %120, %119 : vector<2x32xf32>
    %cst_42 = arith.constant 5.000000e-01 : f32
    %122 = vector.broadcast %cst_42 : f32 to vector<2x32xf32>
    %123 = arith.addf %121, %122 : vector<2x32xf32>
    %124 = vector.extract_strided_slice %107 {offsets = [0, 256], sizes = [2, 32], strides = [1, 1]} : vector<2x512xf32> to vector<2x32xf32>
    %125 = vector.extract_strided_slice %107 {offsets = [0, 384], sizes = [2, 32], strides = [1, 1]} : vector<2x512xf32> to vector<2x32xf32>
    %126 = arith.mulf %115, %125 : vector<2x32xf32>
    %127 = arith.addf %124, %126 : vector<2x32xf32>
    %128 = math.tanh %127 : vector<2x32xf32>
    %129 = arith.subf %75, %128 : vector<2x32xf32>
    %130 = arith.mulf %123, %129 : vector<2x32xf32>
    %131 = arith.addf %128, %130 : vector<2x32xf32>
    %132 = vector.extract_strided_slice %104 {offsets = [0, 512], sizes = [2, 512], strides = [1, 1]} : vector<2x1024xf32> to vector<2x512xf32>
    %133 = arith.addf %132, %10 : vector<2x512xf32>
    %134 = vector.extract_strided_slice %133 {offsets = [0, 0], sizes = [2, 32], strides = [1, 1]} : vector<2x512xf32> to vector<2x32xf32>
    %cst_43 = arith.constant 5.000000e-01 : f32
    %135 = vector.broadcast %cst_43 : f32 to vector<2x32xf32>
    %136 = arith.mulf %135, %134 : vector<2x32xf32>
    %137 = math.tanh %136 : vector<2x32xf32>
    %cst_44 = arith.constant 5.000000e-01 : f32
    %138 = vector.broadcast %cst_44 : f32 to vector<2x32xf32>
    %139 = arith.mulf %138, %137 : vector<2x32xf32>
    %cst_45 = arith.constant 5.000000e-01 : f32
    %140 = vector.broadcast %cst_45 : f32 to vector<2x32xf32>
    %141 = arith.addf %139, %140 : vector<2x32xf32>
    %142 = vector.extract_strided_slice %133 {offsets = [0, 128], sizes = [2, 32], strides = [1, 1]} : vector<2x512xf32> to vector<2x32xf32>
    %cst_46 = arith.constant 5.000000e-01 : f32
    %143 = vector.broadcast %cst_46 : f32 to vector<2x32xf32>
    %144 = arith.mulf %143, %142 : vector<2x32xf32>
    %145 = math.tanh %144 : vector<2x32xf32>
    %cst_47 = arith.constant 5.000000e-01 : f32
    %146 = vector.broadcast %cst_47 : f32 to vector<2x32xf32>
    %147 = arith.mulf %146, %145 : vector<2x32xf32>
    %cst_48 = arith.constant 5.000000e-01 : f32
    %148 = vector.broadcast %cst_48 : f32 to vector<2x32xf32>
    %149 = arith.addf %147, %148 : vector<2x32xf32>
    %150 = vector.extract_strided_slice %133 {offsets = [0, 256], sizes = [2, 32], strides = [1, 1]} : vector<2x512xf32> to vector<2x32xf32>
    %151 = vector.extract_strided_slice %133 {offsets = [0, 384], sizes = [2, 32], strides = [1, 1]} : vector<2x512xf32> to vector<2x32xf32>
    %152 = arith.mulf %141, %151 : vector<2x32xf32>
    %153 = arith.addf %150, %152 : vector<2x32xf32>
    %154 = math.tanh %153 : vector<2x32xf32>
    %155 = arith.subf %101, %154 : vector<2x32xf32>
    %156 = arith.mulf %149, %155 : vector<2x32xf32>
    %157 = arith.addf %154, %156 : vector<2x32xf32>
    %158 = tpu.concatenate %131, %157 in 1 : vector<2x32xf32>, vector<2x32xf32> -> vector<2x64xf32>
    %159 = arith.truncf %158 : vector<2x64xf32> to vector<2x64xbf16>
    %cst_49 = arith.constant dense<0.000000e+00> : vector<2x1024xf32>
    %160 = tpu.matmul %159, %11, %cst_49 {dimension_numbers = #tpu.dot_dimension_numbers<[1], [0], [0], [1], [0, 0, 1, 1], [], []>} : vector<2x64xbf16>, vector<64x1024xbf16>, vector<2x1024xf32> -> vector<2x1024xf32>
    %161 = vector.extract_strided_slice %160 {offsets = [0, 0], sizes = [2, 512], strides = [1, 1]} : vector<2x1024xf32> to vector<2x512xf32>
    %162 = vector.extract_strided_slice %6 {offsets = [24, 0], sizes = [2, 512], strides = [1, 1]} : vector<64x512xf32> to vector<2x512xf32>
    %163 = arith.addf %161, %162 : vector<2x512xf32>
    %164 = vector.extract_strided_slice %163 {offsets = [0, 0], sizes = [2, 32], strides = [1, 1]} : vector<2x512xf32> to vector<2x32xf32>
    %cst_50 = arith.constant 5.000000e-01 : f32
    %165 = vector.broadcast %cst_50 : f32 to vector<2x32xf32>
    %166 = arith.mulf %165, %164 : vector<2x32xf32>
    %167 = math.tanh %166 : vector<2x32xf32>
    %cst_51 = arith.constant 5.000000e-01 : f32
    %168 = vector.broadcast %cst_51 : f32 to vector<2x32xf32>
    %169 = arith.mulf %168, %167 : vector<2x32xf32>
    %cst_52 = arith.constant 5.000000e-01 : f32
    %170 = vector.broadcast %cst_52 : f32 to vector<2x32xf32>
    %171 = arith.addf %169, %170 : vector<2x32xf32>
    %172 = vector.extract_strided_slice %163 {offsets = [0, 128], sizes = [2, 32], strides = [1, 1]} : vector<2x512xf32> to vector<2x32xf32>
    %cst_53 = arith.constant 5.000000e-01 : f32
    %173 = vector.broadcast %cst_53 : f32 to vector<2x32xf32>
    %174 = arith.mulf %173, %172 : vector<2x32xf32>
    %175 = math.tanh %174 : vector<2x32xf32>
    %cst_54 = arith.constant 5.000000e-01 : f32
    %176 = vector.broadcast %cst_54 : f32 to vector<2x32xf32>
    %177 = arith.mulf %176, %175 : vector<2x32xf32>
    %cst_55 = arith.constant 5.000000e-01 : f32
    %178 = vector.broadcast %cst_55 : f32 to vector<2x32xf32>
    %179 = arith.addf %177, %178 : vector<2x32xf32>
    %180 = vector.extract_strided_slice %163 {offsets = [0, 256], sizes = [2, 32], strides = [1, 1]} : vector<2x512xf32> to vector<2x32xf32>
    %181 = vector.extract_strided_slice %163 {offsets = [0, 384], sizes = [2, 32], strides = [1, 1]} : vector<2x512xf32> to vector<2x32xf32>
    %182 = arith.mulf %171, %181 : vector<2x32xf32>
    %183 = arith.addf %180, %182 : vector<2x32xf32>
    %184 = math.tanh %183 : vector<2x32xf32>
    %185 = arith.subf %131, %184 : vector<2x32xf32>
    %186 = arith.mulf %179, %185 : vector<2x32xf32>
    %187 = arith.addf %184, %186 : vector<2x32xf32>
    %188 = vector.extract_strided_slice %160 {offsets = [0, 512], sizes = [2, 512], strides = [1, 1]} : vector<2x1024xf32> to vector<2x512xf32>
    %189 = arith.addf %188, %10 : vector<2x512xf32>
    %190 = vector.extract_strided_slice %189 {offsets = [0, 0], sizes = [2, 32], strides = [1, 1]} : vector<2x512xf32> to vector<2x32xf32>
    %cst_56 = arith.constant 5.000000e-01 : f32
    %191 = vector.broadcast %cst_56 : f32 to vector<2x32xf32>
    %192 = arith.mulf %191, %190 : vector<2x32xf32>
    %193 = math.tanh %192 : vector<2x32xf32>
    %cst_57 = arith.constant 5.000000e-01 : f32
    %194 = vector.broadcast %cst_57 : f32 to vector<2x32xf32>
    %195 = arith.mulf %194, %193 : vector<2x32xf32>
    %cst_58 = arith.constant 5.000000e-01 : f32
    %196 = vector.broadcast %cst_58 : f32 to vector<2x32xf32>
    %197 = arith.addf %195, %196 : vector<2x32xf32>
    %198 = vector.extract_strided_slice %189 {offsets = [0, 128], sizes = [2, 32], strides = [1, 1]} : vector<2x512xf32> to vector<2x32xf32>
    %cst_59 = arith.constant 5.000000e-01 : f32
    %199 = vector.broadcast %cst_59 : f32 to vector<2x32xf32>
    %200 = arith.mulf %199, %198 : vector<2x32xf32>
    %201 = math.tanh %200 : vector<2x32xf32>
    %cst_60 = arith.constant 5.000000e-01 : f32
    %202 = vector.broadcast %cst_60 : f32 to vector<2x32xf32>
    %203 = arith.mulf %202, %201 : vector<2x32xf32>
    %cst_61 = arith.constant 5.000000e-01 : f32
    %204 = vector.broadcast %cst_61 : f32 to vector<2x32xf32>
    %205 = arith.addf %203, %204 : vector<2x32xf32>
    %206 = vector.extract_strided_slice %189 {offsets = [0, 256], sizes = [2, 32], strides = [1, 1]} : vector<2x512xf32> to vector<2x32xf32>
    %207 = vector.extract_strided_slice %189 {offsets = [0, 384], sizes = [2, 32], strides = [1, 1]} : vector<2x512xf32> to vector<2x32xf32>
    %208 = arith.mulf %197, %207 : vector<2x32xf32>
    %209 = arith.addf %206, %208 : vector<2x32xf32>
    %210 = math.tanh %209 : vector<2x32xf32>
    %211 = arith.subf %157, %210 : vector<2x32xf32>
    %212 = arith.mulf %205, %211 : vector<2x32xf32>
    %213 = arith.addf %210, %212 : vector<2x32xf32>
    %214 = tpu.concatenate %187, %213 in 1 : vector<2x32xf32>, vector<2x32xf32> -> vector<2x64xf32>
    %215 = arith.truncf %214 : vector<2x64xf32> to vector<2x64xbf16>
    %cst_62 = arith.constant dense<0.000000e+00> : vector<2x1024xf32>
    %216 = tpu.matmul %215, %11, %cst_62 {dimension_numbers = #tpu.dot_dimension_numbers<[1], [0], [0], [1], [0, 0, 1, 1], [], []>} : vector<2x64xbf16>, vector<64x1024xbf16>, vector<2x1024xf32> -> vector<2x1024xf32>
    %217 = vector.extract_strided_slice %216 {offsets = [0, 0], sizes = [2, 512], strides = [1, 1]} : vector<2x1024xf32> to vector<2x512xf32>
    %218 = vector.extract_strided_slice %6 {offsets = [32, 0], sizes = [2, 512], strides = [1, 1]} : vector<64x512xf32> to vector<2x512xf32>
    %219 = arith.addf %217, %218 : vector<2x512xf32>
    %220 = vector.extract_strided_slice %219 {offsets = [0, 0], sizes = [2, 32], strides = [1, 1]} : vector<2x512xf32> to vector<2x32xf32>
    %cst_63 = arith.constant 5.000000e-01 : f32
    %221 = vector.broadcast %cst_63 : f32 to vector<2x32xf32>
    %222 = arith.mulf %221, %220 : vector<2x32xf32>
    %223 = math.tanh %222 : vector<2x32xf32>
    %cst_64 = arith.constant 5.000000e-01 : f32
    %224 = vector.broadcast %cst_64 : f32 to vector<2x32xf32>
    %225 = arith.mulf %224, %223 : vector<2x32xf32>
    %cst_65 = arith.constant 5.000000e-01 : f32
    %226 = vector.broadcast %cst_65 : f32 to vector<2x32xf32>
    %227 = arith.addf %225, %226 : vector<2x32xf32>
    %228 = vector.extract_strided_slice %219 {offsets = [0, 128], sizes = [2, 32], strides = [1, 1]} : vector<2x512xf32> to vector<2x32xf32>
    %cst_66 = arith.constant 5.000000e-01 : f32
    %229 = vector.broadcast %cst_66 : f32 to vector<2x32xf32>
    %230 = arith.mulf %229, %228 : vector<2x32xf32>
    %231 = math.tanh %230 : vector<2x32xf32>
    %cst_67 = arith.constant 5.000000e-01 : f32
    %232 = vector.broadcast %cst_67 : f32 to vector<2x32xf32>
    %233 = arith.mulf %232, %231 : vector<2x32xf32>
    %cst_68 = arith.constant 5.000000e-01 : f32
    %234 = vector.broadcast %cst_68 : f32 to vector<2x32xf32>
    %235 = arith.addf %233, %234 : vector<2x32xf32>
    %236 = vector.extract_strided_slice %219 {offsets = [0, 256], sizes = [2, 32], strides = [1, 1]} : vector<2x512xf32> to vector<2x32xf32>
    %237 = vector.extract_strided_slice %219 {offsets = [0, 384], sizes = [2, 32], strides = [1, 1]} : vector<2x512xf32> to vector<2x32xf32>
    %238 = arith.mulf %227, %237 : vector<2x32xf32>
    %239 = arith.addf %236, %238 : vector<2x32xf32>
    %240 = math.tanh %239 : vector<2x32xf32>
    %241 = arith.subf %187, %240 : vector<2x32xf32>
    %242 = arith.mulf %235, %241 : vector<2x32xf32>
    %243 = arith.addf %240, %242 : vector<2x32xf32>
    %244 = vector.extract_strided_slice %216 {offsets = [0, 512], sizes = [2, 512], strides = [1, 1]} : vector<2x1024xf32> to vector<2x512xf32>
    %245 = arith.addf %244, %10 : vector<2x512xf32>
    %246 = vector.extract_strided_slice %245 {offsets = [0, 0], sizes = [2, 32], strides = [1, 1]} : vector<2x512xf32> to vector<2x32xf32>
    %cst_69 = arith.constant 5.000000e-01 : f32
    %247 = vector.broadcast %cst_69 : f32 to vector<2x32xf32>
    %248 = arith.mulf %247, %246 : vector<2x32xf32>
    %249 = math.tanh %248 : vector<2x32xf32>
    %cst_70 = arith.constant 5.000000e-01 : f32
    %250 = vector.broadcast %cst_70 : f32 to vector<2x32xf32>
    %251 = arith.mulf %250, %249 : vector<2x32xf32>
    %cst_71 = arith.constant 5.000000e-01 : f32
    %252 = vector.broadcast %cst_71 : f32 to vector<2x32xf32>
    %253 = arith.addf %251, %252 : vector<2x32xf32>
    %254 = vector.extract_strided_slice %245 {offsets = [0, 128], sizes = [2, 32], strides = [1, 1]} : vector<2x512xf32> to vector<2x32xf32>
    %cst_72 = arith.constant 5.000000e-01 : f32
    %255 = vector.broadcast %cst_72 : f32 to vector<2x32xf32>
    %256 = arith.mulf %255, %254 : vector<2x32xf32>
    %257 = math.tanh %256 : vector<2x32xf32>
    %cst_73 = arith.constant 5.000000e-01 : f32
    %258 = vector.broadcast %cst_73 : f32 to vector<2x32xf32>
    %259 = arith.mulf %258, %257 : vector<2x32xf32>
    %cst_74 = arith.constant 5.000000e-01 : f32
    %260 = vector.broadcast %cst_74 : f32 to vector<2x32xf32>
    %261 = arith.addf %259, %260 : vector<2x32xf32>
    %262 = vector.extract_strided_slice %245 {offsets = [0, 256], sizes = [2, 32], strides = [1, 1]} : vector<2x512xf32> to vector<2x32xf32>
    %263 = vector.extract_strided_slice %245 {offsets = [0, 384], sizes = [2, 32], strides = [1, 1]} : vector<2x512xf32> to vector<2x32xf32>
    %264 = arith.mulf %253, %263 : vector<2x32xf32>
    %265 = arith.addf %262, %264 : vector<2x32xf32>
    %266 = math.tanh %265 : vector<2x32xf32>
    %267 = arith.subf %213, %266 : vector<2x32xf32>
    %268 = arith.mulf %261, %267 : vector<2x32xf32>
    %269 = arith.addf %266, %268 : vector<2x32xf32>
    %270 = tpu.concatenate %243, %269 in 1 : vector<2x32xf32>, vector<2x32xf32> -> vector<2x64xf32>
    %271 = arith.truncf %270 : vector<2x64xf32> to vector<2x64xbf16>
    %cst_75 = arith.constant dense<0.000000e+00> : vector<2x1024xf32>
    %272 = tpu.matmul %271, %11, %cst_75 {dimension_numbers = #tpu.dot_dimension_numbers<[1], [0], [0], [1], [0, 0, 1, 1], [], []>} : vector<2x64xbf16>, vector<64x1024xbf16>, vector<2x1024xf32> -> vector<2x1024xf32>
    %273 = vector.extract_strided_slice %272 {offsets = [0, 0], sizes = [2, 512], strides = [1, 1]} : vector<2x1024xf32> to vector<2x512xf32>
    %274 = vector.extract_strided_slice %6 {offsets = [40, 0], sizes = [2, 512], strides = [1, 1]} : vector<64x512xf32> to vector<2x512xf32>
    %275 = arith.addf %273, %274 : vector<2x512xf32>
    %276 = vector.extract_strided_slice %275 {offsets = [0, 0], sizes = [2, 32], strides = [1, 1]} : vector<2x512xf32> to vector<2x32xf32>
    %cst_76 = arith.constant 5.000000e-01 : f32
    %277 = vector.broadcast %cst_76 : f32 to vector<2x32xf32>
    %278 = arith.mulf %277, %276 : vector<2x32xf32>
    %279 = math.tanh %278 : vector<2x32xf32>
    %cst_77 = arith.constant 5.000000e-01 : f32
    %280 = vector.broadcast %cst_77 : f32 to vector<2x32xf32>
    %281 = arith.mulf %280, %279 : vector<2x32xf32>
    %cst_78 = arith.constant 5.000000e-01 : f32
    %282 = vector.broadcast %cst_78 : f32 to vector<2x32xf32>
    %283 = arith.addf %281, %282 : vector<2x32xf32>
    %284 = vector.extract_strided_slice %275 {offsets = [0, 128], sizes = [2, 32], strides = [1, 1]} : vector<2x512xf32> to vector<2x32xf32>
    %cst_79 = arith.constant 5.000000e-01 : f32
    %285 = vector.broadcast %cst_79 : f32 to vector<2x32xf32>
    %286 = arith.mulf %285, %284 : vector<2x32xf32>
    %287 = math.tanh %286 : vector<2x32xf32>
    %cst_80 = arith.constant 5.000000e-01 : f32
    %288 = vector.broadcast %cst_80 : f32 to vector<2x32xf32>
    %289 = arith.mulf %288, %287 : vector<2x32xf32>
    %cst_81 = arith.constant 5.000000e-01 : f32
    %290 = vector.broadcast %cst_81 : f32 to vector<2x32xf32>
    %291 = arith.addf %289, %290 : vector<2x32xf32>
    %292 = vector.extract_strided_slice %275 {offsets = [0, 256], sizes = [2, 32], strides = [1, 1]} : vector<2x512xf32> to vector<2x32xf32>
    %293 = vector.extract_strided_slice %275 {offsets = [0, 384], sizes = [2, 32], strides = [1, 1]} : vector<2x512xf32> to vector<2x32xf32>
    %294 = arith.mulf %283, %293 : vector<2x32xf32>
    %295 = arith.addf %292, %294 : vector<2x32xf32>
    %296 = math.tanh %295 : vector<2x32xf32>
    %297 = arith.subf %243, %296 : vector<2x32xf32>
    %298 = arith.mulf %291, %297 : vector<2x32xf32>
    %299 = arith.addf %296, %298 : vector<2x32xf32>
    %300 = vector.extract_strided_slice %272 {offsets = [0, 512], sizes = [2, 512], strides = [1, 1]} : vector<2x1024xf32> to vector<2x512xf32>
    %301 = arith.addf %300, %10 : vector<2x512xf32>
    %302 = vector.extract_strided_slice %301 {offsets = [0, 0], sizes = [2, 32], strides = [1, 1]} : vector<2x512xf32> to vector<2x32xf32>
    %cst_82 = arith.constant 5.000000e-01 : f32
    %303 = vector.broadcast %cst_82 : f32 to vector<2x32xf32>
    %304 = arith.mulf %303, %302 : vector<2x32xf32>
    %305 = math.tanh %304 : vector<2x32xf32>
    %cst_83 = arith.constant 5.000000e-01 : f32
    %306 = vector.broadcast %cst_83 : f32 to vector<2x32xf32>
    %307 = arith.mulf %306, %305 : vector<2x32xf32>
    %cst_84 = arith.constant 5.000000e-01 : f32
    %308 = vector.broadcast %cst_84 : f32 to vector<2x32xf32>
    %309 = arith.addf %307, %308 : vector<2x32xf32>
    %310 = vector.extract_strided_slice %301 {offsets = [0, 128], sizes = [2, 32], strides = [1, 1]} : vector<2x512xf32> to vector<2x32xf32>
    %cst_85 = arith.constant 5.000000e-01 : f32
    %311 = vector.broadcast %cst_85 : f32 to vector<2x32xf32>
    %312 = arith.mulf %311, %310 : vector<2x32xf32>
    %313 = math.tanh %312 : vector<2x32xf32>
    %cst_86 = arith.constant 5.000000e-01 : f32
    %314 = vector.broadcast %cst_86 : f32 to vector<2x32xf32>
    %315 = arith.mulf %314, %313 : vector<2x32xf32>
    %cst_87 = arith.constant 5.000000e-01 : f32
    %316 = vector.broadcast %cst_87 : f32 to vector<2x32xf32>
    %317 = arith.addf %315, %316 : vector<2x32xf32>
    %318 = vector.extract_strided_slice %301 {offsets = [0, 256], sizes = [2, 32], strides = [1, 1]} : vector<2x512xf32> to vector<2x32xf32>
    %319 = vector.extract_strided_slice %301 {offsets = [0, 384], sizes = [2, 32], strides = [1, 1]} : vector<2x512xf32> to vector<2x32xf32>
    %320 = arith.mulf %309, %319 : vector<2x32xf32>
    %321 = arith.addf %318, %320 : vector<2x32xf32>
    %322 = math.tanh %321 : vector<2x32xf32>
    %323 = arith.subf %269, %322 : vector<2x32xf32>
    %324 = arith.mulf %317, %323 : vector<2x32xf32>
    %325 = arith.addf %322, %324 : vector<2x32xf32>
    %326 = tpu.concatenate %299, %325 in 1 : vector<2x32xf32>, vector<2x32xf32> -> vector<2x64xf32>
    %327 = arith.truncf %326 : vector<2x64xf32> to vector<2x64xbf16>
    %cst_88 = arith.constant dense<0.000000e+00> : vector<2x1024xf32>
    %328 = tpu.matmul %327, %11, %cst_88 {dimension_numbers = #tpu.dot_dimension_numbers<[1], [0], [0], [1], [0, 0, 1, 1], [], []>} : vector<2x64xbf16>, vector<64x1024xbf16>, vector<2x1024xf32> -> vector<2x1024xf32>
    %329 = vector.extract_strided_slice %328 {offsets = [0, 0], sizes = [2, 512], strides = [1, 1]} : vector<2x1024xf32> to vector<2x512xf32>
    %330 = vector.extract_strided_slice %6 {offsets = [48, 0], sizes = [2, 512], strides = [1, 1]} : vector<64x512xf32> to vector<2x512xf32>
    %331 = arith.addf %329, %330 : vector<2x512xf32>
    %332 = vector.extract_strided_slice %331 {offsets = [0, 0], sizes = [2, 32], strides = [1, 1]} : vector<2x512xf32> to vector<2x32xf32>
    %cst_89 = arith.constant 5.000000e-01 : f32
    %333 = vector.broadcast %cst_89 : f32 to vector<2x32xf32>
    %334 = arith.mulf %333, %332 : vector<2x32xf32>
    %335 = math.tanh %334 : vector<2x32xf32>
    %cst_90 = arith.constant 5.000000e-01 : f32
    %336 = vector.broadcast %cst_90 : f32 to vector<2x32xf32>
    %337 = arith.mulf %336, %335 : vector<2x32xf32>
    %cst_91 = arith.constant 5.000000e-01 : f32
    %338 = vector.broadcast %cst_91 : f32 to vector<2x32xf32>
    %339 = arith.addf %337, %338 : vector<2x32xf32>
    %340 = vector.extract_strided_slice %331 {offsets = [0, 128], sizes = [2, 32], strides = [1, 1]} : vector<2x512xf32> to vector<2x32xf32>
    %cst_92 = arith.constant 5.000000e-01 : f32
    %341 = vector.broadcast %cst_92 : f32 to vector<2x32xf32>
    %342 = arith.mulf %341, %340 : vector<2x32xf32>
    %343 = math.tanh %342 : vector<2x32xf32>
    %cst_93 = arith.constant 5.000000e-01 : f32
    %344 = vector.broadcast %cst_93 : f32 to vector<2x32xf32>
    %345 = arith.mulf %344, %343 : vector<2x32xf32>
    %cst_94 = arith.constant 5.000000e-01 : f32
    %346 = vector.broadcast %cst_94 : f32 to vector<2x32xf32>
    %347 = arith.addf %345, %346 : vector<2x32xf32>
    %348 = vector.extract_strided_slice %331 {offsets = [0, 256], sizes = [2, 32], strides = [1, 1]} : vector<2x512xf32> to vector<2x32xf32>
    %349 = vector.extract_strided_slice %331 {offsets = [0, 384], sizes = [2, 32], strides = [1, 1]} : vector<2x512xf32> to vector<2x32xf32>
    %350 = arith.mulf %339, %349 : vector<2x32xf32>
    %351 = arith.addf %348, %350 : vector<2x32xf32>
    %352 = math.tanh %351 : vector<2x32xf32>
    %353 = arith.subf %299, %352 : vector<2x32xf32>
    %354 = arith.mulf %347, %353 : vector<2x32xf32>
    %355 = arith.addf %352, %354 : vector<2x32xf32>
    %356 = vector.extract_strided_slice %328 {offsets = [0, 512], sizes = [2, 512], strides = [1, 1]} : vector<2x1024xf32> to vector<2x512xf32>
    %357 = arith.addf %356, %10 : vector<2x512xf32>
    %358 = vector.extract_strided_slice %357 {offsets = [0, 0], sizes = [2, 32], strides = [1, 1]} : vector<2x512xf32> to vector<2x32xf32>
    %cst_95 = arith.constant 5.000000e-01 : f32
    %359 = vector.broadcast %cst_95 : f32 to vector<2x32xf32>
    %360 = arith.mulf %359, %358 : vector<2x32xf32>
    %361 = math.tanh %360 : vector<2x32xf32>
    %cst_96 = arith.constant 5.000000e-01 : f32
    %362 = vector.broadcast %cst_96 : f32 to vector<2x32xf32>
    %363 = arith.mulf %362, %361 : vector<2x32xf32>
    %cst_97 = arith.constant 5.000000e-01 : f32
    %364 = vector.broadcast %cst_97 : f32 to vector<2x32xf32>
    %365 = arith.addf %363, %364 : vector<2x32xf32>
    %366 = vector.extract_strided_slice %357 {offsets = [0, 128], sizes = [2, 32], strides = [1, 1]} : vector<2x512xf32> to vector<2x32xf32>
    %cst_98 = arith.constant 5.000000e-01 : f32
    %367 = vector.broadcast %cst_98 : f32 to vector<2x32xf32>
    %368 = arith.mulf %367, %366 : vector<2x32xf32>
    %369 = math.tanh %368 : vector<2x32xf32>
    %cst_99 = arith.constant 5.000000e-01 : f32
    %370 = vector.broadcast %cst_99 : f32 to vector<2x32xf32>
    %371 = arith.mulf %370, %369 : vector<2x32xf32>
    %cst_100 = arith.constant 5.000000e-01 : f32
    %372 = vector.broadcast %cst_100 : f32 to vector<2x32xf32>
    %373 = arith.addf %371, %372 : vector<2x32xf32>
    %374 = vector.extract_strided_slice %357 {offsets = [0, 256], sizes = [2, 32], strides = [1, 1]} : vector<2x512xf32> to vector<2x32xf32>
    %375 = vector.extract_strided_slice %357 {offsets = [0, 384], sizes = [2, 32], strides = [1, 1]} : vector<2x512xf32> to vector<2x32xf32>
    %376 = arith.mulf %365, %375 : vector<2x32xf32>
    %377 = arith.addf %374, %376 : vector<2x32xf32>
    %378 = math.tanh %377 : vector<2x32xf32>
    %379 = arith.subf %325, %378 : vector<2x32xf32>
    %380 = arith.mulf %373, %379 : vector<2x32xf32>
    %381 = arith.addf %378, %380 : vector<2x32xf32>
    %382 = tpu.concatenate %355, %381 in 1 : vector<2x32xf32>, vector<2x32xf32> -> vector<2x64xf32>
    %383 = arith.truncf %382 : vector<2x64xf32> to vector<2x64xbf16>
    %cst_101 = arith.constant dense<0.000000e+00> : vector<2x1024xf32>
    %384 = tpu.matmul %383, %11, %cst_101 {dimension_numbers = #tpu.dot_dimension_numbers<[1], [0], [0], [1], [0, 0, 1, 1], [], []>} : vector<2x64xbf16>, vector<64x1024xbf16>, vector<2x1024xf32> -> vector<2x1024xf32>
    %385 = vector.extract_strided_slice %384 {offsets = [0, 0], sizes = [2, 512], strides = [1, 1]} : vector<2x1024xf32> to vector<2x512xf32>
    %386 = vector.extract_strided_slice %6 {offsets = [56, 0], sizes = [2, 512], strides = [1, 1]} : vector<64x512xf32> to vector<2x512xf32>
    %387 = arith.addf %385, %386 : vector<2x512xf32>
    %388 = vector.extract_strided_slice %387 {offsets = [0, 0], sizes = [2, 32], strides = [1, 1]} : vector<2x512xf32> to vector<2x32xf32>
    %cst_102 = arith.constant 5.000000e-01 : f32
    %389 = vector.broadcast %cst_102 : f32 to vector<2x32xf32>
    %390 = arith.mulf %389, %388 : vector<2x32xf32>
    %391 = math.tanh %390 : vector<2x32xf32>
    %cst_103 = arith.constant 5.000000e-01 : f32
    %392 = vector.broadcast %cst_103 : f32 to vector<2x32xf32>
    %393 = arith.mulf %392, %391 : vector<2x32xf32>
    %cst_104 = arith.constant 5.000000e-01 : f32
    %394 = vector.broadcast %cst_104 : f32 to vector<2x32xf32>
    %395 = arith.addf %393, %394 : vector<2x32xf32>
    %396 = vector.extract_strided_slice %387 {offsets = [0, 128], sizes = [2, 32], strides = [1, 1]} : vector<2x512xf32> to vector<2x32xf32>
    %cst_105 = arith.constant 5.000000e-01 : f32
    %397 = vector.broadcast %cst_105 : f32 to vector<2x32xf32>
    %398 = arith.mulf %397, %396 : vector<2x32xf32>
    %399 = math.tanh %398 : vector<2x32xf32>
    %cst_106 = arith.constant 5.000000e-01 : f32
    %400 = vector.broadcast %cst_106 : f32 to vector<2x32xf32>
    %401 = arith.mulf %400, %399 : vector<2x32xf32>
    %cst_107 = arith.constant 5.000000e-01 : f32
    %402 = vector.broadcast %cst_107 : f32 to vector<2x32xf32>
    %403 = arith.addf %401, %402 : vector<2x32xf32>
    %404 = vector.extract_strided_slice %387 {offsets = [0, 256], sizes = [2, 32], strides = [1, 1]} : vector<2x512xf32> to vector<2x32xf32>
    %405 = vector.extract_strided_slice %387 {offsets = [0, 384], sizes = [2, 32], strides = [1, 1]} : vector<2x512xf32> to vector<2x32xf32>
    %406 = arith.mulf %395, %405 : vector<2x32xf32>
    %407 = arith.addf %404, %406 : vector<2x32xf32>
    %408 = math.tanh %407 : vector<2x32xf32>
    %409 = arith.subf %355, %408 : vector<2x32xf32>
    %410 = arith.mulf %403, %409 : vector<2x32xf32>
    %411 = arith.addf %408, %410 : vector<2x32xf32>
    %412 = vector.extract_strided_slice %384 {offsets = [0, 512], sizes = [2, 512], strides = [1, 1]} : vector<2x1024xf32> to vector<2x512xf32>
    %413 = arith.addf %412, %10 : vector<2x512xf32>
    %414 = vector.extract_strided_slice %413 {offsets = [0, 0], sizes = [2, 32], strides = [1, 1]} : vector<2x512xf32> to vector<2x32xf32>
    %cst_108 = arith.constant 5.000000e-01 : f32
    %415 = vector.broadcast %cst_108 : f32 to vector<2x32xf32>
    %416 = arith.mulf %415, %414 : vector<2x32xf32>
    %417 = math.tanh %416 : vector<2x32xf32>
    %cst_109 = arith.constant 5.000000e-01 : f32
    %418 = vector.broadcast %cst_109 : f32 to vector<2x32xf32>
    %419 = arith.mulf %418, %417 : vector<2x32xf32>
    %cst_110 = arith.constant 5.000000e-01 : f32
    %420 = vector.broadcast %cst_110 : f32 to vector<2x32xf32>
    %421 = arith.addf %419, %420 : vector<2x32xf32>
    %422 = vector.extract_strided_slice %413 {offsets = [0, 128], sizes = [2, 32], strides = [1, 1]} : vector<2x512xf32> to vector<2x32xf32>
    %cst_111 = arith.constant 5.000000e-01 : f32
    %423 = vector.broadcast %cst_111 : f32 to vector<2x32xf32>
    %424 = arith.mulf %423, %422 : vector<2x32xf32>
    %425 = math.tanh %424 : vector<2x32xf32>
    %cst_112 = arith.constant 5.000000e-01 : f32
    %426 = vector.broadcast %cst_112 : f32 to vector<2x32xf32>
    %427 = arith.mulf %426, %425 : vector<2x32xf32>
    %cst_113 = arith.constant 5.000000e-01 : f32
    %428 = vector.broadcast %cst_113 : f32 to vector<2x32xf32>
    %429 = arith.addf %427, %428 : vector<2x32xf32>
    %430 = vector.extract_strided_slice %413 {offsets = [0, 256], sizes = [2, 32], strides = [1, 1]} : vector<2x512xf32> to vector<2x32xf32>
    %431 = vector.extract_strided_slice %413 {offsets = [0, 384], sizes = [2, 32], strides = [1, 1]} : vector<2x512xf32> to vector<2x32xf32>
    %432 = arith.mulf %421, %431 : vector<2x32xf32>
    %433 = arith.addf %430, %432 : vector<2x32xf32>
    %434 = math.tanh %433 : vector<2x32xf32>
    %435 = arith.subf %381, %434 : vector<2x32xf32>
    %436 = arith.mulf %429, %435 : vector<2x32xf32>
    %437 = arith.addf %434, %436 : vector<2x32xf32>
    %438 = tpu.concatenate %411, %437 in 1 : vector<2x32xf32>, vector<2x32xf32> -> vector<2x64xf32>
    %439 = arith.truncf %438 : vector<2x64xf32> to vector<2x64xbf16>
    %cst_114 = arith.constant dense<0.000000e+00> : vector<2x1024xf32>
    %440 = tpu.matmul %439, %11, %cst_114 {dimension_numbers = #tpu.dot_dimension_numbers<[1], [0], [0], [1], [0, 0, 1, 1], [], []>} : vector<2x64xbf16>, vector<64x1024xbf16>, vector<2x1024xf32> -> vector<2x1024xf32>
    %441 = vector.extract_strided_slice %440 {offsets = [0, 512], sizes = [2, 512], strides = [1, 1]} : vector<2x1024xf32> to vector<2x512xf32>
    %442 = arith.addf %441, %10 : vector<2x512xf32>
    %443 = vector.extract_strided_slice %442 {offsets = [0, 0], sizes = [2, 32], strides = [1, 1]} : vector<2x512xf32> to vector<2x32xf32>
    %cst_115 = arith.constant 5.000000e-01 : f32
    %444 = vector.broadcast %cst_115 : f32 to vector<2x32xf32>
    %445 = arith.mulf %444, %443 : vector<2x32xf32>
    %446 = math.tanh %445 : vector<2x32xf32>
    %cst_116 = arith.constant 5.000000e-01 : f32
    %447 = vector.broadcast %cst_116 : f32 to vector<2x32xf32>
    %448 = arith.mulf %447, %446 : vector<2x32xf32>
    %cst_117 = arith.constant 5.000000e-01 : f32
    %449 = vector.broadcast %cst_117 : f32 to vector<2x32xf32>
    %450 = arith.addf %448, %449 : vector<2x32xf32>
    %451 = vector.extract_strided_slice %442 {offsets = [0, 128], sizes = [2, 32], strides = [1, 1]} : vector<2x512xf32> to vector<2x32xf32>
    %cst_118 = arith.constant 5.000000e-01 : f32
    %452 = vector.broadcast %cst_118 : f32 to vector<2x32xf32>
    %453 = arith.mulf %452, %451 : vector<2x32xf32>
    %454 = math.tanh %453 : vector<2x32xf32>
    %cst_119 = arith.constant 5.000000e-01 : f32
    %455 = vector.broadcast %cst_119 : f32 to vector<2x32xf32>
    %456 = arith.mulf %455, %454 : vector<2x32xf32>
    %cst_120 = arith.constant 5.000000e-01 : f32
    %457 = vector.broadcast %cst_120 : f32 to vector<2x32xf32>
    %458 = arith.addf %456, %457 : vector<2x32xf32>
    %459 = vector.extract_strided_slice %442 {offsets = [0, 256], sizes = [2, 32], strides = [1, 1]} : vector<2x512xf32> to vector<2x32xf32>
    %460 = vector.extract_strided_slice %442 {offsets = [0, 384], sizes = [2, 32], strides = [1, 1]} : vector<2x512xf32> to vector<2x32xf32>
    %461 = arith.mulf %450, %460 : vector<2x32xf32>
    %462 = arith.addf %459, %461 : vector<2x32xf32>
    %463 = math.tanh %462 : vector<2x32xf32>
    %464 = arith.subf %437, %463 : vector<2x32xf32>
    %465 = arith.mulf %458, %464 : vector<2x32xf32>
    %466 = arith.addf %463, %465 : vector<2x32xf32>
    %c0_121 = arith.constant 0 : index
    %c0_122 = arith.constant 0 : index
    %467 = vector.load %arg5[%c0_121, %c0_122] : memref<32x16xf32, #tpu.memory_space<vmem>>, vector<32x16xf32>
    %cst_123 = arith.constant dense<0.000000e+00> : vector<2x16xf32>
    %468 = tpu.matmul %466, %467, %cst_123 {dimension_numbers = #tpu.dot_dimension_numbers<[1], [0], [0], [1], [0, 0, 1, 1], [], []>} : vector<2x32xf32>, vector<32x16xf32>, vector<2x16xf32> -> vector<2x16xf32>
    %c0_124 = arith.constant 0 : index
    %c0_125 = arith.constant 0 : index
    %469 = vector.load %arg6[%c0_124, %c0_125] : memref<1x16xf32, #tpu.memory_space<vmem>>, vector<1x16xf32>
    %470 = vector.broadcast %469 : vector<1x16xf32> to vector<2x16xf32>
    %471 = arith.addf %468, %470 : vector<2x16xf32>
    %cst_126 = arith.constant 0.000000e+00 : f32
    %472 = vector.broadcast %cst_126 : f32 to vector<2x16xf32>
    %473 = arith.maximumf %471, %472 : vector<2x16xf32>
    %c0_127 = arith.constant 0 : index
    %c0_128 = arith.constant 0 : index
    %474 = vector.load %arg7[%c0_127, %c0_128] : memref<16x8xf32, #tpu.memory_space<vmem>>, vector<16x8xf32>
    %cst_129 = arith.constant dense<0.000000e+00> : vector<2x8xf32>
    %475 = tpu.matmul %473, %474, %cst_129 {dimension_numbers = #tpu.dot_dimension_numbers<[1], [0], [0], [1], [0, 0, 1, 1], [], []>} : vector<2x16xf32>, vector<16x8xf32>, vector<2x8xf32> -> vector<2x8xf32>
    %c0_130 = arith.constant 0 : index
    %c0_131 = arith.constant 0 : index
    %476 = vector.load %arg8[%c0_130, %c0_131] : memref<1x8xf32, #tpu.memory_space<vmem>>, vector<1x8xf32>
    %477 = vector.broadcast %476 : vector<1x8xf32> to vector<2x8xf32>
    %478 = arith.addf %475, %477 : vector<2x8xf32>
    %cst_132 = arith.constant 0.000000e+00 : f32
    %479 = vector.broadcast %cst_132 : f32 to vector<2x8xf32>
    %480 = arith.maximumf %478, %479 : vector<2x8xf32>
    %c0_133 = arith.constant 0 : index
    %c0_134 = arith.constant 0 : index
    %481 = vector.load %arg9[%c0_133, %c0_134] : memref<8x2xf32, #tpu.memory_space<vmem>>, vector<8x2xf32>
    %cst_135 = arith.constant dense<0.000000e+00> : vector<2x2xf32>
    %482 = tpu.matmul %480, %481, %cst_135 {dimension_numbers = #tpu.dot_dimension_numbers<[1], [0], [0], [1], [0, 0, 1, 1], [], []>} : vector<2x8xf32>, vector<8x2xf32>, vector<2x2xf32> -> vector<2x2xf32>
    %c0_136 = arith.constant 0 : index
    %c0_137 = arith.constant 0 : index
    %483 = vector.load %arg10[%c0_136, %c0_137] : memref<1x2xf32, #tpu.memory_space<vmem>>, vector<1x2xf32>
    %484 = vector.broadcast %483 : vector<1x2xf32> to vector<2x2xf32>
    %485 = arith.addf %482, %484 : vector<2x2xf32>
    %c0_138 = arith.constant 0 : index
    %c0_139 = arith.constant 0 : index
    %486 = vector.load %arg11[%c0_138, %c0_139] : memref<2x2xf32, #tpu.memory_space<vmem>>, vector<2x2xf32>
    tpu.vector_store %arg11[%c0_138, %c0_139], %485 {strides = array<i32>} : memref<2x2xf32, #tpu.memory_space<vmem>>, vector<2x2xf32>,
    return
  }
}

</mosaic_0001>

<bundles_post_ra>
// kernel: gru_v3_forward.1
= control target key start
LH: loop header
LB: loop body
LE: loop exit
PB: predicated region body
PF: predicated region fallthrough
CT: control target
= control target key end

     0   :  { %16 = vsyncpa [#allocation3], 0  ;;  %s3800_s0 = inlined_call_operand.vmem [shape: bf16[64,128], index: 0, kind: input, shape index: {}]   ;;  %s3801_s1 = inlined_call_operand.vmem [shape: f32[2,2,32], index: 1, kind: input, shape index: {}]   ;;  %s3802_s2 = inlined_call_operand.hbm [shape: bf16[128,512], index: 2, kind: input, shape index: {}]   ;;  %s3803_s3 = inlined_call_operand.hbm [shape: bf16[64,1024], index: 3, kind: input, shape index: {}]   ;;  %s3804_s4 = inlined_call_operand.vmem [shape: f32[2,1,512], index: 4, kind: input, shape index: {}]   ;;  %s3805_s5 = inlined_call_operand.vmem [shape: f32[32,16], index: 5, kind: input, shape index: {}]   ;;  %s3806_s6 = inlined_call_operand.vmem [shape: f32[1,16], index: 6, kind: input, shape index: {}]   ;;  %s3807_s7 = inlined_call_operand.vmem [shape: f32[16,8], index: 7, kind: input, shape index: {}]   ;;  %s3808_s8 = inlined_call_operand.vmem [shape: f32[1,8], index: 8, kind: input, shape index: {}]   ;;  %s3809_s9 = inlined_call_operand.vmem [shape: f32[8,2], index: 9, kind: input, shape index: {}]   ;;  %s3810_s10 = inlined_call_operand.vmem [shape: f32[1,2], index: 10, kind: input, shape index: {}]   ;;  %s3811_s11 = inlined_call_operand.hbm [shape: f32[2,2], index: 11, kind: output, shape index: {}]  }
   0x1   :  { %17 = vsyncpa [#allocation6], 0 }
   0x2   :  { %18 = vsyncpa [#allocation4], 0  ;;  %s2991_s17 = smov [#allocation2]  }
   0x3   :  { %s28_s18 = sshll.u32 %s2991_s17, 4  ;;  %s29_s18 = int_to_ptr.vmem [resolvable:$true] %s28_s18 }
   0x4   :  { %s2933_s19 = scalar_lea.vmem %s29_s18, 4096  ;;  %p2938_p1 = scmp.lt.s32.totalorder %s29_s18, %s29_s18 }
   0x5   :  { %p2934_p0 = scmp.ne.s32.totalorder %s29_s18, %s2933_s19  ;;  %p2939_p2 = scmp.lt.s32.totalorder %s2933_s19, %s2933_s19 }
   0x7   :  { %p2940_p3 = por %p2939_p2, %p2938_p1 }
   0x9   :  { %p2941_p4 = pnand %p2940_p3, %p2934_p0 }
   0xb   :  { %2944 = shalt.err (!%p2941_p4)
}
   0xc   :  { %s2992_s20 = smov 256   ;;  %s2993_s21 = smov 16  }
   0xd   :  { %34 = dma.hbm_to_vmem [thread:$0]  %s3802_s2, 4096, %s29_s18, [#allocation3], %s2992_s20, %s2992_s20, %s2993_s21  }
   0xe   :  { %s2994_s24 = smov [#allocation5]  }
   0xf   :  { %s40_s25 = sshll.u32 %s2994_s24, 4  ;;  %s41_s25 = int_to_ptr.vmem [resolvable:$true] %s40_s25 }
  0x10   :  { %s2953_s26 = scalar_lea.vmem %s41_s25, 4096  ;;  %p2958_p6 = scmp.lt.s32.totalorder %s41_s25, %s41_s25 }
  0x11   :  { %p2954_p5 = scmp.ne.s32.totalorder %s41_s25, %s2953_s26  ;;  %p2959_p7 = scmp.lt.s32.totalorder %s2953_s26, %s2953_s26 }
  0x13   :  { %p2960_p8 = por %p2959_p7, %p2958_p6 }
  0x15   :  { %p2961_p9 = pnand %p2960_p8, %p2954_p5 }
  0x17   :  { %2964 = shalt.err (!%p2961_p9)
}
  0x18   :  { %s2995_s27 = smov 512   ;;  %s2996_s28 = smov 32  }
  0x19   :  { %46 = dma.hbm_to_vmem [thread:$0]  %s3803_s3, 4096, %s41_s25, [#allocation6], %s2995_s27, %s2995_s27, %s2996_s28  }
  0x1a   :  { %2985 = dma.done.wait [#allocation3], 4096  }
  0x1b   :  { %2986 = vsyncadd [#allocation3], 4294963200 }
  0x1c   :  { %2987 = dma.done.wait [#allocation6], 4096  }
  0x1d   :  { %2988 = vsyncadd [#allocation6], 4294963200  ;;  %v3816_v0 = vmov 0   ;;  %v3073_v1 = vld [vmem:[%s3801_s1 + $0x2] sm:$0x3]  ;;  %v508_v35 = vld [vmem:[#allocation5 + $0xc8] sm:$0xff] }
  0x1e   :  { %346 = vmatprep.mubr.bf16.mxu0 %v3816_v0  ;;  %419 = vmatprep.mubr.bf16.mxu1 %v3816_v0  ;;  %v2777_v2 = vld [vmem:[#allocation2 + $0xe4] ss:$16 sps:$4 sm:$0xff]   ;;  %v2779_v3 = vld [vmem:[#allocation2 + $0xe0] ss:$16 sps:$4 sm:$0xff]   ;;  %v2783_v6 = vld [vmem:[#allocation2 + $0xec] ss:$16 sps:$4 sm:$0xff]  }
  0x1f   :  { %519 = vrot.lane.b32.xlu0 %v3073_v1, %s2996_s28  ;;  %v2780_v4 = vld [vmem:[#allocation2 + $0xc4] ss:$16 sps:$4 sm:$0xff]   ;;  %v2782_v5 = vld [vmem:[#allocation2 + $0xc0] ss:$16 sps:$4 sm:$0xff]   ;;  %314 = vmatprep.subr.bf16.mxu0 %v2777_v2  ;;  %v2785_v7 = vld [vmem:[#allocation2 + $0xe8] ss:$16 sps:$4 sm:$0xff]  }
  0x20   :  { %315 = vmatpush1.bf16.msra.mxu0 %v2779_v3  ;;  %387 = vmatprep.subr.bf16.mxu1 %v2783_v6  ;;  %v2786_v8 = vld [vmem:[#allocation2 + $0xa4] ss:$16 sps:$4 sm:$0xff]   ;;  %v2789_v9 = vld [vmem:[#allocation2 + $0xcc] ss:$16 sps:$4 sm:$0xff]   ;;  %v2791_v10 = vld [vmem:[#allocation2 + $0xc8] ss:$16 sps:$4 sm:$0xff]  }
  0x21   :  { %316 = vmatprep.subr.bf16.mxu0 %v2780_v4  ;;  %388 = vmatpush1.bf16.msra.mxu1 %v2785_v7  ;;  %v2788_v11 = vld [vmem:[#allocation2 + $0xa0] ss:$16 sps:$4 sm:$0xff]   ;;  %v2792_v12 = vld [vmem:[#allocation2 + $0x84] ss:$16 sps:$4 sm:$0xff]   ;;  %v2795_v13 = vld [vmem:[#allocation2 + $0xac] ss:$16 sps:$4 sm:$0xff]  }
  0x22   :  { %389 = vmatprep.subr.bf16.mxu1 %v2789_v9  ;;  %v2797_v14 = vld [vmem:[#allocation2 + $0xa8] ss:$16 sps:$4 sm:$0xff]   ;;  %v2801_v15 = vld [vmem:[#allocation2 + $0x8c] ss:$16 sps:$4 sm:$0xff]   ;;  %v2794_v16 = vld [vmem:[#allocation2 + $0x80] ss:$16 sps:$4 sm:$0xff]  }
  0x23   :  { %v2798_v17 = vld [vmem:[#allocation2 + $0x64] ss:$16 sps:$4 sm:$0xff]   ;;  %v2803_v18 = vld [vmem:[#allocation2 + $0x88] ss:$16 sps:$4 sm:$0xff]   ;;  %v2807_v19 = vld [vmem:[#allocation2 + $0x6c] ss:$16 sps:$4 sm:$0xff]  }
  0x24   :  { %317 = vmatpush1.bf16.msra.mxu0 %v2782_v5  ;;  %v2800_v20 = vld [vmem:[#allocation2 + $0x60] ss:$16 sps:$4 sm:$0xff]   ;;  %v2804_v21 = vld [vmem:[#allocation2 + $0x44] ss:$16 sps:$4 sm:$0xff]   ;;  %v2809_v22 = vld [vmem:[#allocation2 + $0x68] ss:$16 sps:$4 sm:$0xff]  }
  0x25   :  { %318 = vmatprep.subr.bf16.mxu0 %v2786_v8  ;;  %390 = vmatpush1.bf16.msra.mxu1 %v2791_v10  ;;  %v2813_v23 = vld [vmem:[#allocation2 + $0x4c] ss:$16 sps:$4 sm:$0xff]   ;;  %v2806_v24 = vld [vmem:[#allocation2 + $0x40] ss:$16 sps:$4 sm:$0xff]   ;;  %v2810_v25 = vld [vmem:[#allocation2 + $0x24] ss:$16 sps:$4 sm:$0xff]  }
  0x26   :  { %391 = vmatprep.subr.bf16.mxu1 %v2795_v13  ;;  %v2815_v26 = vld [vmem:[#allocation2 + $0x48] ss:$16 sps:$4 sm:$0xff]   ;;  %v2819_v27 = vld [vmem:[#allocation2 + $0x2c] ss:$16 sps:$4 sm:$0xff]   ;;  %v2812_v28 = vld [vmem:[#allocation2 + $0x20] ss:$16 sps:$4 sm:$0xff]  }
  0x27   :  { %v2816_v29 = vld [vmem:[#allocation2 + $0x4] ss:$16 sps:$4 sm:$0xff]   ;;  %v2821_v30 = vld [vmem:[#allocation2 + $0x28] ss:$16 sps:$4 sm:$0xff]   ;;  %v2823_v33 = vld [vmem:[#allocation2 + $0xc] ss:$16 sps:$4 sm:$0xff]  }
  0x28   :  { %319 = vmatpush1.bf16.msra.mxu0 %v2788_v11  ;;  %v507_v31 = vld [vmem:[#allocation5 + $0xc0] sm:$0xff]  ;;  %v512_v36 = vld [vmem:[#allocation5 + $0xe8] sm:$0xff]  ;;  %v2827_v6 = vld [vmem:[%s3800_s0 + $0x10] sm:$0xff]   ;;  %vm522_vm0 = vcmask 261120   ;;  %vm605_vm1 = vcmask 523264   ;;  %vm2999_vm2 = vmmov 0  }
  0x29   :  { %320 = vmatprep.subr.bf16.mxu0 %v2792_v12  ;;  %392 = vmatpush1.bf16.msra.mxu1 %v2797_v14  ;;  %v511_v32 = vld [vmem:[#allocation5 + $0xe0] sm:$0xff]  ;;  %v2825_v38 = vld [vmem:[#allocation2 + $0x8] ss:$16 sps:$4 sm:$0xff]   ;;  %v3082_v42 = vcombine.high %v508_v35, %v512_v36  ;;  %v3089_v49 = vcombine.low %v508_v35, %v512_v36  ;;  %v110_v12 = vlaneseq  ;;  %vm2451_vm3 = vcmask 130048   ;;  %s3000_s19 = smov [#allocation7]  }
  0x2a   :  { %393 = vmatprep.subr.bf16.mxu1 %v2801_v15  ;;  %v2818_v34 = vld [vmem:[#allocation2] ss:$16 sps:$4 sm:$0xff]   ;;  %v3077_v37 = vcombine.high %v507_v31, %v511_v32  ;;  %v3084_v43 = vcombine.low %v507_v31, %v511_v32  ;;  %v500_v44 = vld [vmem:[#allocation5 + $0x88] sm:$0xff]  ;;  %v2828_v7 = vld [vmem:[%s3800_s0 + $0x18] sm:$0xff]   ;;  %vm2534_vm4 = vcmask 64512   ;;  %s2616_s20 = sshll.u32 %s3000_s19, 4  ;;  %s2617_s20 = int_to_ptr.vmem [resolvable:$true] %s2616_s20 }
  0x2b   :  { %v499_v39 = vld [vmem:[#allocation5 + $0x80] sm:$0xff]  ;;  %v504_v45 = vld [vmem:[#allocation5 + $0xa8] sm:$0xff]  ;;  %v3175_v13 = vshrl.u32 %v110_v12, 7  ;;  %v509_v15 = vld [vmem:[#allocation5 + $0xd0] sm:$0xff]  ;;  %vm2608_vm5 = vcmask 9216   ;;  %p2970_p11 = scmp.lt.s32.totalorder %s2617_s20, %s2617_s20 }
  0x2c   :  { %321 = vmatpush1.bf16.msra.mxu0 %v2794_v16  ;;  %v503_v40 = vld [vmem:[#allocation5 + $0xa0] sm:$0xff]  ;;  %v3092_v50 = vcombine.high %v500_v44, %v504_v45  ;;  %v492_v52 = vld [vmem:[#allocation5 + $0x48] sm:$0xff]  ;;  %v3103_v55 = vcombine.low %v500_v44, %v504_v45  ;;  %v513_v16 = vld [vmem:[#allocation5 + $0xf0] sm:$0xff] }
  0x2d   :  { %322 = vmatprep.subr.bf16.mxu0 %v2798_v17  ;;  %394 = vmatpush1.bf16.msra.mxu1 %v2803_v18  ;;  %v2822_v41 = vld [vmem:[%s3800_s0] sm:$0xff]   ;;  %v3087_v46 = vcombine.high %v499_v39, %v503_v40  ;;  %v3096_v51 = vcombine.low %v499_v39, %v503_v40  ;;  %v496_v53 = vld [vmem:[#allocation5 + $0x68] sm:$0xff]  ;;  %v3815_v14 = vsub.s32 0, %v3175_v13  ;;  %v510_v17 = vld [vmem:[#allocation5 + $0xd8] sm:$0xff] }
  0x2e   :  { %395 = vmatprep.subr.bf16.mxu1 %v2807_v19  ;;  %v491_v47 = vld [vmem:[#allocation5 + $0x40] sm:$0xff]  ;;  %v2826_v58 = vld [vmem:[%s3800_s0 + $0x8] sm:$0xff]   ;;  %v3109_v59 = vcombine.high %v492_v52, %v496_v53  ;;  %v3118_v2 = vcombine.low %v492_v52, %v496_v53  ;;  %v3181_v19 = vcombine.high %v509_v15, %v513_v16 }
  0x2f   :  { %v495_v48 = vld [vmem:[#allocation5 + $0x60] sm:$0xff]  ;;  %v484_v61 = vld [vmem:[#allocation5 + $0x8] sm:$0xff] }
  0x30   :  { %323 = vmatpush1.bf16.msra.mxu0 %v2800_v20  ;;  %v3099_v54 = vcombine.high %v491_v47, %v495_v48  ;;  %v483_v56 = vld [vmem:[#allocation5] sm:$0xff]  ;;  %v3112_v60 = vcombine.low %v491_v47, %v495_v48  ;;  %v488_v62 = vld [vmem:[#allocation5 + $0x28] sm:$0xff]  ;;  %v514_v20 = vld [vmem:[#allocation5 + $0xf8] sm:$0xff] }
  0x31   :  { %324 = vmatprep.subr.bf16.mxu0 %v2804_v21  ;;  %396 = vmatpush1.bf16.msra.mxu1 %v2809_v22  ;;  %v487_v57 = vld [vmem:[#allocation5 + $0x20] sm:$0xff]  ;;  %v3121_v3 = vcombine.high %v484_v61, %v488_v62  ;;  %v3130_v5 = vcombine.low %v484_v61, %v488_v62  ;;  %v3814_v21 = vsub.s32 1, %v3175_v13  ;;  %v3812_v22 = vsub.s32 2, %v3175_v13 }
  0x32   :  { %397 = vmatprep.subr.bf16.mxu1 %v2813_v23  ;;  %v3115_v63 = vcombine.high %v483_v56, %v487_v57  ;;  %v3125_v4 = vcombine.low %v483_v56, %v487_v57  ;;  %v3150_v8 = vld [vmem:[%s3801_s1] sm:$0x3]  ;;  %v3185_v23 = vcombine.high %v510_v17, %v514_v20  ;;  %v3219_v36 = vcombine.low %v510_v17, %v514_v20 }
  0x33   :  { %v108_v18 = vld [vmem:[%s3804_s4] sm:$0xf] }
  0x34   :  { %325 = vmatpush1.bf16.msra.mxu0 %v2806_v24 }
  0x35   :  { %326 = vmatprep.subr.bf16.mxu0 %v2810_v25  ;;  %398 = vmatpush1.bf16.msra.mxu1 %v2815_v26  ;;  %v3192_v25 = vrot.slane %v108_v18, %v3815_v14  ;;  %v3813_v26 = vsub.s32 3, %v3175_v13 }
  0x36   :  { %399 = vmatprep.subr.bf16.mxu1 %v2819_v27 }
  0x37   :  { %v3217_v35 = vrot.slane %v108_v18, %v3813_v26 }
  0x38   :  { %327 = vmatpush1.bf16.msra.mxu0 %v2812_v28 }
  0x39   :  { %328 = vmatprep.subr.bf16.mxu0 %v2816_v29  ;;  %400 = vmatpush1.bf16.msra.mxu1 %v2821_v30  ;;  %v3202_v29 = vrot.slane %v108_v18, %v3814_v21  ;;  %v3206_v30 = vrot.slane %v108_v18, %v3812_v22 }
  0x3a   :  { %401 = vmatprep.subr.bf16.mxu1 %v2823_v33  ;;  %v3210_v33 = vcombine.low %v509_v15, %v513_v16 }
  0x3c   :  { %329 = vmatpush1.bf16.msra.mxu0 %v2818_v34 }
  0x3d   :  { %617 = vmatprep.subr.bf16.mxu0 %v3077_v37  ;;  %402 = vmatpush1.bf16.msra.mxu1 %v2825_v38 }
  0x3e   :  { %658 = vmatprep.subr.bf16.mxu1 %v3082_v42 }
  0x3f   :  { %347 = vmatmul.mubr.bf16.vlgmr.msra.gmra.mxu0 %v2822_v41 }
  0x40   :  { %618 = vmatpush1.bf16.msra.mxu0 %v3084_v43  ;;  %356 = vmatprep.mubr.bf16.mxu0 %v3816_v0 }
  0x41   :  { %420 = vmatmul.mubr.bf16.vlgmr.msra.gmra.mxu1 %v2822_v41  ;;  %619 = vmatprep.subr.bf16.mxu0 %v3087_v46 }
  0x42   :  { %429 = vmatprep.mubr.bf16.mxu1 %v3816_v0  ;;  %659 = vmatpush1.bf16.msra.mxu1 %v3089_v49 }
  0x43   :  { %660 = vmatprep.subr.bf16.mxu1 %v3092_v50 }
  0x44   :  { %620 = vmatpush1.bf16.msra.mxu0 %v3096_v51 }
  0x45   :  { %621 = vmatprep.subr.bf16.mxu0 %v3099_v54 }
  0x46   :  { %661 = vmatpush1.bf16.msra.mxu1 %v3103_v55 }
  0x47   :  { %357 = vmatmul.mubr.bf16.gmra.mxu0 %v2826_v58  ;;  %662 = vmatprep.subr.bf16.mxu1 %v3109_v59 }
  0x48   :  { %366 = vmatprep.mubr.bf16.mxu0 %v3816_v0  ;;  %622 = vmatpush1.bf16.msra.mxu0 %v3112_v60 }
  0x49   :  { %430 = vmatmul.mubr.bf16.gmra.mxu1 %v2826_v58  ;;  %623 = vmatprep.subr.bf16.mxu0 %v3115_v63 }
  0x4a   :  { %439 = vmatprep.mubr.bf16.mxu1 %v3816_v0  ;;  %663 = vmatpush1.bf16.msra.mxu1 %v3118_v2 }
  0x4b   :  { %664 = vmatprep.subr.bf16.mxu1 %v3121_v3 }
  0x4c   :  { %624 = vmatpush1.bf16.msra.mxu0 %v3125_v4 }
  0x4d   :  { %802 = vmatprep.subr.bf16.mxu0 %v3077_v37 }
  0x4e   :  { %665 = vmatpush1.bf16.msra.mxu1 %v3130_v5 }
  0x4f   :  { %367 = vmatmul.mubr.bf16.gmra.mxu0 %v2827_v6  ;;  %843 = vmatprep.subr.bf16.mxu1 %v3082_v42 }
  0x50   :  { %376 = vmatprep.mubr.bf16.mxu0 %v3816_v0 }
  0x51   :  { %440 = vmatmul.mubr.bf16.gmra.mxu1 %v2827_v6 }
  0x52   :  { %449 = vmatprep.mubr.bf16.mxu1 %v3816_v0 }
  0x57   :  { %377 = vmatmul.mubr.bf16.gmra.mxu0 %v2828_v7 }
  0x58   :  { %641 = vmatprep.mubr.bf16.mxu0 %v3816_v0 }
  0x59   :  { %450 = vmatmul.mubr.bf16.gmra.mxu1 %v2828_v7 }
  0x5a   :  { %682 = vmatprep.mubr.bf16.mxu1 %v3816_v0 }
  0x91   :  { %v3152_v9 = vpop.permute.xlu0 %519 }
  0x92   :  { %v523_v10 = vsel %vm522_vm0, %v3150_v8, %v3152_v9 }
  0x93   :  { %v524_v11 = vpack.c.bf16 %v523_v10, %v523_v10 }
  0x95   :  { %2680 = vmatmul.mubr.msk.bf16.vlgmr.msra.gmra.mxu0 %vm605_vm1, %v524_v11  ;;  %2681 = vmatmul.mubr.msk.bf16.vlgmr.msra.gmra.mxu1 %vm605_vm1, %v524_v11 }
  0x96   :  { %803 = vmatpush1.bf16.msra.mxu0 %v3084_v43  ;;  %844 = vmatpush1.bf16.msra.mxu1 %v3089_v49 }
  0x97   :  { %804 = vmatprep.subr.bf16.mxu0 %v3087_v46  ;;  %845 = vmatprep.subr.bf16.mxu1 %v3092_v50 }
  0x98   :  { %826 = vmatprep.mubr.bf16.mxu0 %v3816_v0  ;;  %867 = vmatprep.mubr.bf16.mxu1 %v3816_v0 }
  0x9a   :  { %805 = vmatpush1.bf16.msra.mxu0 %v3096_v51  ;;  %846 = vmatpush1.bf16.msra.mxu1 %v3103_v55 }
  0x9b   :  { %806 = vmatprep.subr.bf16.mxu0 %v3099_v54  ;;  %847 = vmatprep.subr.bf16.mxu1 %v3109_v59 }
  0x9e   :  { %807 = vmatpush1.bf16.msra.mxu0 %v3112_v60  ;;  %848 = vmatpush1.bf16.msra.mxu1 %v3118_v2 }
  0x9f   :  { %808 = vmatprep.subr.bf16.mxu0 %v3115_v63  ;;  %849 = vmatprep.subr.bf16.mxu1 %v3121_v3 }
  0xa2   :  { %809 = vmatpush1.bf16.msra.mxu0 %v3125_v4  ;;  %850 = vmatpush1.bf16.msra.mxu1 %v3130_v5 }
  0xa3   :  { %884 = vmatprep.subr.bf16.mxu0 %v3181_v19  ;;  %925 = vmatprep.subr.bf16.mxu1 %v3185_v23 }
  0xff   :  { %v3187_v24 = vpop.f32.mrf.mxu0 }
 0x101   :  { %v3196_v27 = vpop.f32.mrf.mxu0  ;;  %v3198_v28 = vpop.f32.mrf.mxu1 }
 0x103   :  { %v352_v31 = vpop.f32.mrf.mxu0  ;;  %v3208_v32 = vpop.f32.mrf.mxu1 }
 0x104   :  { %v3213_v34 = vadd.f32 %v352_v31, %v3192_v25 }
 0x105   :  { %v354_v38 = vpop.f32.mrf.mxu0  ;;  %v425_v39 = vpop.f32.mrf.mxu1 }
 0x106   :  { %v3222_v40 = vadd.f32 %v354_v38, %v3202_v29  ;;  %v3225_v41 = vadd.f32 %v425_v39, %v3206_v30 }
 0x107   :  { %v358_v44 = vpop.f32.mrf.mxu0  ;;  %v427_v45 = vpop.f32.mrf.mxu1 }
 0x108   :  { %v3228_v47 = vadd.f32 %v358_v44, %v3192_v25  ;;  %v3231_v48 = vadd.f32 %v427_v45, %v3217_v35 }
 0x109   :  { %v360_v52 = vpop.f32.mrf.mxu0  ;;  %v431_v53 = vpop.f32.mrf.mxu1 }
 0x10a   :  { %v3234_v56 = vadd.f32 %v360_v52, %v3202_v29  ;;  %v3237_v57 = vadd.f32 %v431_v53, %v3206_v30 }
 0x10b   :  { %v362_v58 = vpop.f32.mrf.mxu0  ;;  %v433_v61 = vpop.f32.mrf.mxu1 }
 0x10c   :  { %v3240_v62 = vadd.f32 %v362_v58, %v3192_v25  ;;  %v3243_v6 = vadd.f32 %v433_v61, %v3217_v35 }
 0x10d   :  { %v364_v7 = vpop.f32.mrf.mxu0  ;;  %v435_v10 = vpop.f32.mrf.mxu1 }
 0x10e   :  { %3818 = vst [vmem:[#allocation11_spill] sm:$0xff] %v3240_v62  ;;  %v3246_v11 = vadd.f32 %v364_v7, %v3202_v29  ;;  %v3249_v12 = vadd.f32 %v435_v10, %v3206_v30 }
 0x10f   :  { %v368_v15 = vpop.f32.mrf.mxu0  ;;  %v437_v16 = vpop.f32.mrf.mxu1 }
 0x110   :  { %3819 = vst [vmem:[#allocation12_spill] sm:$0xff] %v3246_v11  ;;  %3820 = vst [vmem:[#allocation13_spill] sm:$0xff] %v3249_v12  ;;  %v3252_v17 = vadd.f32 %v368_v15, %v3192_v25  ;;  %v3255_v18 = vadd.f32 %v437_v16, %v3217_v35 }
 0x111   :  { %v370_v20 = vpop.f32.mrf.mxu0  ;;  %v441_v31 = vpop.f32.mrf.mxu1 }
 0x112   :  { %3821 = vst [vmem:[#allocation14_spill] sm:$0xff] %v3252_v17  ;;  %3822 = vst [vmem:[#allocation15_spill] sm:$0xff] %v3255_v18  ;;  %v3258_v38 = vadd.f32 %v370_v20, %v3202_v29  ;;  %v3261_v39 = vadd.f32 %v441_v31, %v3206_v30 }
 0x113   :  { %v372_v44 = vpop.f32.mrf.mxu0  ;;  %v443_v45 = vpop.f32.mrf.mxu1 }
 0x114   :  { %3823 = vst [vmem:[#allocation16_spill] sm:$0xff] %v3258_v38  ;;  %3824 = vst [vmem:[#allocation17_spill] sm:$0xff] %v3261_v39  ;;  %v3264_v52 = vadd.f32 %v372_v44, %v3192_v25  ;;  %v3267_v53 = vadd.f32 %v443_v45, %v3217_v35  ;;  %v2662_v38 = vld [vmem:[%s3804_s4 + $0x4] sm:$0xf] }
 0x115   :  { %v374_v58 = vpop.f32.mrf.mxu0  ;;  %v445_v61 = vpop.f32.mrf.mxu1 }
 0x116   :  { %3825 = vst [vmem:[#allocation18_spill] sm:$0xff] %v3264_v52  ;;  %3826 = vst [vmem:[#allocation19_spill] sm:$0xff] %v3267_v53  ;;  %v3270_v7 = vadd.f32 %v374_v58, %v3202_v29  ;;  %v3273_v10 = vadd.f32 %v445_v61, %v3206_v30 }
 0x117   :  { %v378_v15 = vpop.f32.mrf.mxu0  ;;  %v447_v16 = vpop.f32.mrf.mxu1 }
 0x118   :  { %3827 = vst [vmem:[#allocation20_spill] sm:$0xff] %v3270_v7  ;;  %3828 = vst [vmem:[#allocation21_spill] sm:$0xff] %v3273_v10  ;;  %v3276_v20 = vadd.f32 %v378_v15, %v3192_v25  ;;  %v3279_v31 = vadd.f32 %v447_v16, %v3217_v35 }
 0x119   :  { %v380_v44 = vpop.f32.mrf.mxu0  ;;  %v451_v22 = vpop.f32.mrf.mxu1 }
 0x11a   :  { %3829 = vst [vmem:[#allocation22_spill] sm:$0xff] %v3276_v20  ;;  %3830 = vst [vmem:[#allocation23_spill] sm:$0xff] %v3279_v31  ;;  %v3282_v45 = vadd.f32 %v380_v44, %v3202_v29  ;;  %v3285_v26 = vadd.f32 %v451_v22, %v3206_v30 }
 0x11b   :  { %v382_v58 = vpop.f32.mrf.mxu0  ;;  %v453_v21 = vpop.f32.mrf.mxu1 }
 0x11c   :  { %3831 = vst [vmem:[#allocation24_spill] sm:$0xff] %v3282_v45  ;;  %3832 = vst [vmem:[#allocation25_spill] sm:$0xff] %v3285_v26  ;;  %v3288_v61 = vadd.f32 %v382_v58, %v3192_v25  ;;  %v3291_v14 = vadd.f32 %v453_v21, %v3217_v35  ;;  %v349_v45 = vadd.f32 %v3187_v24, %v3192_v25 }
 0x11d   :  { %v384_v15 = vpop.f32.mrf.mxu0  ;;  %v455_v0 = vpop.f32.mrf.mxu1  ;;  %v424_v24 = vadd.f32 %v3208_v32, %v3217_v35 }
 0x11e   :  { %3833 = vst [vmem:[#allocation26_spill] sm:$0xff] %v3288_v61  ;;  %3834 = vst [vmem:[#allocation27_spill] sm:$0xff] %v3291_v14  ;;  %v3294_v16 = vadd.f32 %v384_v15, %v3202_v29  ;;  %v3297_v20 = vadd.f32 %v455_v0, %v3206_v30  ;;  %v351_v0 = vadd.f32 %v3196_v27, %v3202_v29 }
 0x11f   :  { %v457_v44 = vpop.f32.mrf.mxu1 }
 0x120   :  { %3835 = vst [vmem:[#allocation28_spill] sm:$0xff] %v3294_v16  ;;  %3836 = vst [vmem:[#allocation29_spill] sm:$0xff] %v3297_v20  ;;  %v3300_v22 = vadd.f32 %v457_v44, %v3217_v35  ;;  %v505_v35 = vld [vmem:[#allocation5 + $0xb0] sm:$0xff] }
 0x122   :  { %3837 = vst [vmem:[#allocation30_spill] sm:$0xff] %v3300_v22 }
 0x155   :  { %v643_v58 = vpop.f32.mrf.mxu0  ;;  %v684_v61 = vpop.f32.mrf.mxu1 }
 0x156   :  { %v691_v26 = vadd.f32 %v643_v58, %v349_v45  ;;  %v422_v45 = vadd.f32 %v3198_v28, %v3206_v30  ;;  %v506_v28 = vld [vmem:[#allocation5 + $0xb8] sm:$0xff] }
 0x157   :  { %v645_v21 = vpop.f32.mrf.mxu0  ;;  %v686_v14 = vpop.f32.mrf.mxu1 }
 0x158   :  { %v695_v31 = vmul.f32 0.5, %v691_v26  ;;  %v692_v20 = vadd.f32 %v645_v21, %v351_v0  ;;  %v694_v26 = vadd.f32 %v686_v14, %v424_v24  ;;  %v501_v0 = vld [vmem:[#allocation5 + $0x90] sm:$0xff] }
 0x159   :  { %v647_v7 = vpop.f32.mrf.mxu0  ;;  %v688_v10 = vpop.f32.mrf.mxu1  ;;  %v493_v24 = vld [vmem:[#allocation5 + $0x50] sm:$0xff] }
 0x15a   :  { %2829 = vtanh.f32 %v695_v31  ;;  %v699_v44 = vmul.f32 0.5, %v692_v20  ;;  %v693_v10 = vadd.f32 %v684_v61, %v422_v45  ;;  %v3316_v61 = vcombine.high %v501_v0, %v505_v35  ;;  %v494_v45 = vld [vmem:[#allocation5 + $0x58] sm:$0xff] }
 0x15b   :  { %v648_v15 = vpop.f32.mrf.mxu0  ;;  %v689_v16 = vpop.f32.mrf.mxu1 }
 0x15c   :  { %2831 = vtanh.f32 %v699_v44 }
 0x167   :  { %v2830_v22 = vpop.eup %2829 }
 0x168   :  { %v697_v25 = vmul.f32 0.5, %v2830_v22  ;;  %v502_v22 = vld [vmem:[#allocation5 + $0x98] sm:$0xff] }
 0x169   :  { %v2832_v16 = vpop.eup %2831  ;;  %v3318_v44 = vcombine.high %v502_v22, %v506_v28 }
 0x16a   :  { %v698_v7 = vadd.f32 0.5, %v697_v25  ;;  %v701_v15 = vmul.f32 0.5, %v2832_v16  ;;  %v497_v25 = vld [vmem:[#allocation5 + $0x70] sm:$0xff]  ;;  %v486_v16 = vld [vmem:[#allocation5 + $0x18] sm:$0xff] }
 0x16c   :  { %v703_v31 = vmul.f32 %v698_v7, %v694_v26  ;;  %v702_v29 = vadd.f32 0.5, %v701_v15  ;;  %v3324_v26 = vcombine.low %v501_v0, %v505_v35  ;;  %v3330_v7 = vcombine.high %v493_v24, %v497_v25  ;;  %v490_v15 = vld [vmem:[#allocation5 + $0x38] sm:$0xff] }
 0x16d   :  { %v3346_v0 = vcombine.high %v486_v16, %v490_v15 }
 0x16e   :  { %v704_v58 = vadd.f32 %v703_v31, %v693_v10  ;;  %v485_v31 = vld [vmem:[#allocation5 + $0x10] sm:$0xff] }
 0x170   :  { %2833 = vtanh.f32 %v704_v58  ;;  %v489_v58 = vld [vmem:[#allocation5 + $0x30] sm:$0xff] }
 0x171   :  { %v3350_v35 = vcombine.low %v485_v31, %v489_v58 }
 0x17d   :  { %v2834_v27 = vpop.eup %2833 }
 0x17e   :  { %v706_v20 = vsub.f32 %v3150_v8, %v2834_v27  ;;  %v498_v8 = vld [vmem:[#allocation5 + $0x78] sm:$0xff] }
 0x17f   :  { %v3332_v10 = vcombine.high %v494_v45, %v498_v8 }
 0x180   :  { %v707_v21 = vmul.f32 %v706_v20, %v702_v29  ;;  %v3338_v29 = vcombine.low %v493_v24, %v497_v25  ;;  %v3340_v20 = vcombine.low %v494_v45, %v498_v8 }
 0x182   :  { %v3311_v32 = vadd.f32 %v2834_v27, %v707_v21  ;;  %v3838_v27 = vmov 0   ;;  %v3344_v21 = vcombine.high %v485_v31, %v489_v58 }
 0x184   :  { %v709_v14 = vsel %vm522_vm0, %v3311_v32, %v3152_v9  ;;  %v3326_v9 = vcombine.low %v502_v22, %v506_v28  ;;  %v3352_v22 = vcombine.low %v486_v16, %v490_v15 }
 0x185   :  { %v710_v30 = vpack.c.bf16 %v709_v14, %v709_v14 }
 0x187   :  { %2698 = vmatmul.mubr.msk.bf16.vlgmr.msra.gmra.mxu0 %vm605_vm1, %v710_v30  ;;  %2699 = vmatmul.mubr.msk.bf16.vlgmr.msra.gmra.mxu1 %vm605_vm1, %v710_v30 }
 0x188   :  { %885 = vmatpush1.bf16.msra.mxu0 %v3210_v33  ;;  %926 = vmatpush1.bf16.msra.mxu1 %v3219_v36 }
 0x189   :  { %886 = vmatprep.subr.bf16.mxu0 %v3316_v61  ;;  %927 = vmatprep.subr.bf16.mxu1 %v3318_v44 }
 0x18a   :  { %908 = vmatprep.mubr.bf16.mxu0 %v3838_v27  ;;  %949 = vmatprep.mubr.bf16.mxu1 %v3838_v27 }
 0x18c   :  { %887 = vmatpush1.bf16.msra.mxu0 %v3324_v26  ;;  %928 = vmatpush1.bf16.msra.mxu1 %v3326_v9 }
 0x18d   :  { %888 = vmatprep.subr.bf16.mxu0 %v3330_v7  ;;  %929 = vmatprep.subr.bf16.mxu1 %v3332_v10 }
 0x190   :  { %889 = vmatpush1.bf16.msra.mxu0 %v3338_v29  ;;  %930 = vmatpush1.bf16.msra.mxu1 %v3340_v20 }
 0x191   :  { %890 = vmatprep.subr.bf16.mxu0 %v3344_v21  ;;  %931 = vmatprep.subr.bf16.mxu1 %v3346_v0 }
 0x194   :  { %891 = vmatpush1.bf16.msra.mxu0 %v3350_v35  ;;  %932 = vmatpush1.bf16.msra.mxu1 %v3352_v22 }
 0x195   :  { %1011 = vmatprep.subr.bf16.mxu0 %v3077_v37  ;;  %1052 = vmatprep.subr.bf16.mxu1 %v3082_v42 }
 0x197   :  { %2700 = vmatmul.mubr.msk.bf16.vlgmr.msra.gmra.mxu0 %vm605_vm1, %v710_v30  ;;  %2701 = vmatmul.mubr.msk.bf16.vlgmr.msra.gmra.mxu1 %vm605_vm1, %v710_v30 }
 0x198   :  { %1012 = vmatpush1.bf16.msra.mxu0 %v3084_v43  ;;  %1053 = vmatpush1.bf16.msra.mxu1 %v3089_v49 }
 0x199   :  { %1013 = vmatprep.subr.bf16.mxu0 %v3087_v46  ;;  %1054 = vmatprep.subr.bf16.mxu1 %v3092_v50 }
 0x19a   :  { %1035 = vmatprep.mubr.bf16.mxu0 %v3838_v27  ;;  %1076 = vmatprep.mubr.bf16.mxu1 %v3838_v27 }
 0x19c   :  { %1014 = vmatpush1.bf16.msra.mxu0 %v3096_v51  ;;  %1055 = vmatpush1.bf16.msra.mxu1 %v3103_v55 }
 0x19d   :  { %1015 = vmatprep.subr.bf16.mxu0 %v3099_v54  ;;  %1056 = vmatprep.subr.bf16.mxu1 %v3109_v59 }
 0x1a0   :  { %1016 = vmatpush1.bf16.msra.mxu0 %v3112_v60  ;;  %1057 = vmatpush1.bf16.msra.mxu1 %v3118_v2 }
 0x1a1   :  { %1017 = vmatprep.subr.bf16.mxu0 %v3115_v63  ;;  %1058 = vmatprep.subr.bf16.mxu1 %v3121_v3 }
 0x1a4   :  { %1018 = vmatpush1.bf16.msra.mxu0 %v3125_v4  ;;  %1059 = vmatpush1.bf16.msra.mxu1 %v3130_v5 }
 0x1a5   :  { %1093 = vmatprep.subr.bf16.mxu0 %v3181_v19  ;;  %1134 = vmatprep.subr.bf16.mxu1 %v3185_v23 }
 0x247   :  { %v828_v28 = vpop.f32.mrf.mxu0  ;;  %v869_v14 = vpop.f32.mrf.mxu1 }
 0x248   :  { %v958_v30 = vadd.f32 %v828_v28, %v3213_v34  ;;  %v960_v24 = vadd.f32 %v869_v14, %v3225_v41  ;;  %v3839_v34 = vsub.s32 0, %v3175_v13 }
 0x249   :  { %v830_v25 = vpop.f32.mrf.mxu0  ;;  %v871_v45 = vpop.f32.mrf.mxu1 }
 0x24a   :  { %v962_v8 = vmul.f32 0.5, %v958_v30  ;;  %v959_v31 = vadd.f32 %v830_v25, %v3222_v40  ;;  %v961_v58 = vadd.f32 %v871_v45, %v3231_v48  ;;  %v3389_v28 = vrot.slane %v2662_v38, %v3839_v34 }
 0x24b   :  { %v832_v16 = vpop.f32.mrf.mxu0  ;;  %v873_v15 = vpop.f32.mrf.mxu1 }
 0x24c   :  { %2835 = vtanh.f32 %v962_v8  ;;  %v966_v41 = vmul.f32 0.5, %v959_v31  ;;  %v3840_v31 = vsub.s32 1, %v3175_v13 }
 0x24d   :  { %v833_v52 = vpop.f32.mrf.mxu0  ;;  %v874_v53 = vpop.f32.mrf.mxu1 }
 0x24e   :  { %2837 = vtanh.f32 %v966_v41  ;;  %v3394_v11 = vrot.slane %v2662_v38, %v3840_v31 }
 0x257   :  { %v910_v14 = vpop.f32.mrf.mxu0  ;;  %v951_v30 = vpop.f32.mrf.mxu1 }
 0x258   :  { %v976_v40 = vadd.f32 %v910_v14, %v3389_v28 }
 0x259   :  { %v2836_v25 = vpop.eup %2835  ;;  %v912_v48 = vpop.f32.mrf.mxu0 }
 0x25a   :  { %v953_v45 = vpop.f32.mrf.mxu1  ;;  %v964_v16 = vmul.f32 0.5, %v2836_v25  ;;  %v980_v8 = vmul.f32 0.5, %v976_v40  ;;  %v977_v14 = vadd.f32 %v912_v48, %v3394_v11  ;;  %v3841_v40 = vsub.s32 3, %v3175_v13 }
 0x25b   :  { %v914_v52 = vpop.f32.mrf.mxu0  ;;  %v2838_v12 = vpop.eup %2837 }
 0x25c   :  { %v955_v53 = vpop.f32.mrf.mxu1  ;;  %v965_v15 = vadd.f32 0.5, %v964_v16  ;;  %2839 = vtanh.f32 %v980_v8  ;;  %v984_v62 = vmul.f32 0.5, %v977_v14  ;;  %v3399_v41 = vrot.slane %v2662_v38, %v3841_v40 }
 0x25d   :  { %v915_v39 = vpop.f32.mrf.mxu0  ;;  %v3842_v16 = vsub.s32 2, %v3175_v13 }
 0x25e   :  { %v956_v17 = vpop.f32.mrf.mxu1  ;;  %v970_v18 = vmul.f32 %v965_v15, %v961_v58 }
 0x25f   :  { %v3403_v39 = vrot.slane %v2662_v38, %v3842_v16 }
 0x260   :  { %v971_v34 = vadd.f32 %v970_v18, %v960_v24  ;;  %v968_v18 = vmul.f32 0.5, %v2838_v12  ;;  %v979_v24 = vadd.f32 %v953_v45, %v3399_v41 }
 0x261   :  { %v978_v8 = vadd.f32 %v951_v30, %v3403_v39 }
 0x262   :  { %2841 = vtanh.f32 %v971_v34  ;;  %v969_v53 = vadd.f32 0.5, %v968_v18 }
 0x263   :  { %2843 = vtanh.f32 %v984_v62 }
 0x269   :  { %v2840_v25 = vpop.eup %2839 }
 0x26a   :  { %v982_v17 = vmul.f32 0.5, %v2840_v25 }
 0x26c   :  { %v983_v58 = vadd.f32 0.5, %v982_v17 }
 0x26e   :  { %v988_v48 = vmul.f32 %v983_v58, %v979_v24 }
 0x26f   :  { %v2842_v52 = vpop.eup %2841 }
 0x270   :  { %v989_v15 = vadd.f32 %v988_v48, %v978_v8  ;;  %v973_v34 = vsub.f32 %v3311_v32, %v2842_v52  ;;  %v2844_v13 = vpop.eup %2843 }
 0x271   :  { %v986_v38 = vmul.f32 0.5, %v2844_v13 }
 0x272   :  { %2845 = vtanh.f32 %v989_v15  ;;  %v974_v31 = vmul.f32 %v973_v34, %v969_v53 }
 0x273   :  { %v987_v12 = vadd.f32 0.5, %v986_v38 }
 0x274   :  { %v3408_v14 = vadd.f32 %v2842_v52, %v974_v31 }
 0x27f   :  { %v2846_v40 = vpop.eup %2845 }
 0x280   :  { %v991_v62 = vsub.f32 %v3073_v1, %v2846_v40 }
 0x282   :  { %v992_v45 = vmul.f32 %v991_v62, %v987_v12 }
 0x284   :  { %v3411_v25 = vadd.f32 %v2846_v40, %v992_v45 }
 0x286   :  { %995 = vrot.lane.b32.xlu0 %v3411_v25, %s2996_s28 }
 0x2f8   :  { %v996_v30 = vpop.permute.xlu0 %995 }
 0x2f9   :  { %v998_v32 = vsel %vm522_vm0, %v3408_v14, %v996_v30 }
 0x2fa   :  { %v999_v16 = vpack.c.bf16 %v998_v32, %v998_v32 }
 0x2fc   :  { %2702 = vmatmul.mubr.msk.bf16.vlgmr.msra.gmra.mxu0 %vm605_vm1, %v999_v16  ;;  %2703 = vmatmul.mubr.msk.bf16.vlgmr.msra.gmra.mxu1 %vm605_vm1, %v999_v16 }
 0x2fd   :  { %1094 = vmatpush1.bf16.msra.mxu0 %v3210_v33  ;;  %1135 = vmatpush1.bf16.msra.mxu1 %v3219_v36 }
 0x2fe   :  { %1095 = vmatprep.subr.bf16.mxu0 %v3316_v61  ;;  %1136 = vmatprep.subr.bf16.mxu1 %v3318_v44 }
 0x2ff   :  { %1117 = vmatprep.mubr.bf16.mxu0 %v3838_v27  ;;  %1158 = vmatprep.mubr.bf16.mxu1 %v3838_v27 }
 0x301   :  { %1096 = vmatpush1.bf16.msra.mxu0 %v3324_v26  ;;  %1137 = vmatpush1.bf16.msra.mxu1 %v3326_v9 }
 0x302   :  { %1097 = vmatprep.subr.bf16.mxu0 %v3330_v7  ;;  %1138 = vmatprep.subr.bf16.mxu1 %v3332_v10 }
 0x305   :  { %1098 = vmatpush1.bf16.msra.mxu0 %v3338_v29  ;;  %1139 = vmatpush1.bf16.msra.mxu1 %v3340_v20 }
 0x306   :  { %1099 = vmatprep.subr.bf16.mxu0 %v3344_v21  ;;  %1140 = vmatprep.subr.bf16.mxu1 %v3346_v0 }
 0x309   :  { %1100 = vmatpush1.bf16.msra.mxu0 %v3350_v35  ;;  %1141 = vmatpush1.bf16.msra.mxu1 %v3352_v22 }
 0x30a   :  { %1220 = vmatprep.subr.bf16.mxu0 %v3077_v37  ;;  %1261 = vmatprep.subr.bf16.mxu1 %v3082_v42 }
 0x30c   :  { %2704 = vmatmul.mubr.msk.bf16.vlgmr.msra.gmra.mxu0 %vm605_vm1, %v999_v16  ;;  %2705 = vmatmul.mubr.msk.bf16.vlgmr.msra.gmra.mxu1 %vm605_vm1, %v999_v16 }
 0x30d   :  { %1221 = vmatpush1.bf16.msra.mxu0 %v3084_v43  ;;  %1262 = vmatpush1.bf16.msra.mxu1 %v3089_v49 }
 0x30e   :  { %1222 = vmatprep.subr.bf16.mxu0 %v3087_v46  ;;  %1263 = vmatprep.subr.bf16.mxu1 %v3092_v50 }
 0x30f   :  { %1244 = vmatprep.mubr.bf16.mxu0 %v3838_v27  ;;  %1285 = vmatprep.mubr.bf16.mxu1 %v3838_v27 }
 0x311   :  { %1223 = vmatpush1.bf16.msra.mxu0 %v3096_v51  ;;  %1264 = vmatpush1.bf16.msra.mxu1 %v3103_v55 }
 0x312   :  { %1224 = vmatprep.subr.bf16.mxu0 %v3099_v54  ;;  %1265 = vmatprep.subr.bf16.mxu1 %v3109_v59 }
 0x315   :  { %1225 = vmatpush1.bf16.msra.mxu0 %v3112_v60  ;;  %1266 = vmatpush1.bf16.msra.mxu1 %v3118_v2 }
 0x316   :  { %1226 = vmatprep.subr.bf16.mxu0 %v3115_v63  ;;  %1267 = vmatprep.subr.bf16.mxu1 %v3121_v3 }
 0x319   :  { %1227 = vmatpush1.bf16.msra.mxu0 %v3125_v4  ;;  %1268 = vmatpush1.bf16.msra.mxu1 %v3130_v5 }
 0x31a   :  { %1302 = vmatprep.subr.bf16.mxu0 %v3181_v19  ;;  %1343 = vmatprep.subr.bf16.mxu1 %v3185_v23 }
 0x3bc   :  { %v1037_v1 = vpop.f32.mrf.mxu0  ;;  %v1078_v17 = vpop.f32.mrf.mxu1 }
 0x3bd   :  { %v1167_v18 = vadd.f32 %v1037_v1, %v3228_v47  ;;  %v1169_v24 = vadd.f32 %v1078_v17, %v3237_v57 }
 0x3be   :  { %v1039_v58 = vpop.f32.mrf.mxu0  ;;  %v1080_v8 = vpop.f32.mrf.mxu1 }
 0x3bf   :  { %v1171_v48 = vmul.f32 0.5, %v1167_v18  ;;  %v1168_v52 = vadd.f32 %v1039_v58, %v3234_v56  ;;  %v1170_v53 = vadd.f32 %v1080_v8, %v3243_v6 }
 0x3c0   :  { %v1041_v15 = vpop.f32.mrf.mxu0  ;;  %v1082_v34 = vpop.f32.mrf.mxu1 }
 0x3c1   :  { %2847 = vtanh.f32 %v1171_v48  ;;  %v1175_v38 = vmul.f32 0.5, %v1168_v52 }
 0x3c2   :  { %v1042_v31 = vpop.f32.mrf.mxu0  ;;  %v1083_v13 = vpop.f32.mrf.mxu1 }
 0x3c3   :  { %2849 = vtanh.f32 %v1175_v38 }
 0x3cc   :  { %v1119_v40 = vpop.f32.mrf.mxu0  ;;  %v1160_v12 = vpop.f32.mrf.mxu1 }
 0x3cd   :  { %v1185_v62 = vadd.f32 %v1119_v40, %v3389_v28  ;;  %v1187_v40 = vadd.f32 %v1160_v12, %v3403_v39 }
 0x3ce   :  { %v2848_v47 = vpop.eup %2847  ;;  %v1121_v45 = vpop.f32.mrf.mxu0 }
 0x3cf   :  { %v1162_v57 = vpop.f32.mrf.mxu1  ;;  %v1173_v30 = vmul.f32 0.5, %v2848_v47  ;;  %v1189_v32 = vmul.f32 0.5, %v1185_v62  ;;  %v1186_v8 = vadd.f32 %v1121_v45, %v3394_v11 }
 0x3d0   :  { %v1123_v16 = vpop.f32.mrf.mxu0  ;;  %v2850_v48 = vpop.eup %2849  ;;  %v1188_v13 = vadd.f32 %v1162_v57, %v3399_v41 }
 0x3d1   :  { %v1164_v56 = vpop.f32.mrf.mxu1  ;;  %v1174_v1 = vadd.f32 0.5, %v1173_v30  ;;  %2851 = vtanh.f32 %v1189_v32  ;;  %v1193_v52 = vmul.f32 0.5, %v1186_v8  ;;  %v1177_v31 = vmul.f32 0.5, %v2850_v48  ;;  %v3843_v48 = vld [vmem:[#allocation11_spill] sm:$0xff] }
 0x3d2   :  { %v1124_v6 = vpop.f32.mrf.mxu0 }
 0x3d3   :  { %v1165_v17 = vpop.f32.mrf.mxu1  ;;  %v1179_v18 = vmul.f32 %v1174_v1, %v1170_v53  ;;  %v1178_v30 = vadd.f32 0.5, %v1177_v31 }
 0x3d5   :  { %v1180_v58 = vadd.f32 %v1179_v18, %v1169_v24 }
 0x3d7   :  { %2853 = vtanh.f32 %v1180_v58 }
 0x3d8   :  { %2855 = vtanh.f32 %v1193_v52 }
 0x3de   :  { %v2852_v15 = vpop.eup %2851 }
 0x3df   :  { %v1191_v34 = vmul.f32 0.5, %v2852_v15  ;;  %v3844_v15 = vld [vmem:[#allocation13_spill] sm:$0xff] }
 0x3e1   :  { %v1192_v38 = vadd.f32 0.5, %v1191_v34 }
 0x3e3   :  { %v1197_v62 = vmul.f32 %v1192_v38, %v1188_v13 }
 0x3e4   :  { %v2854_v47 = vpop.eup %2853 }
 0x3e5   :  { %v1198_v32 = vadd.f32 %v1197_v62, %v1187_v40  ;;  %v1182_v24 = vsub.f32 %v3408_v14, %v2854_v47  ;;  %v2856_v16 = vpop.eup %2855  ;;  %v3845_v40 = vld [vmem:[#allocation12_spill] sm:$0xff] }
 0x3e6   :  { %v1195_v56 = vmul.f32 0.5, %v2856_v16 }
 0x3e7   :  { %2857 = vtanh.f32 %v1198_v32  ;;  %v1183_v53 = vmul.f32 %v1182_v24, %v1178_v30 }
 0x3e8   :  { %v1196_v6 = vadd.f32 0.5, %v1195_v56 }
 0x3e9   :  { %v3466_v45 = vadd.f32 %v2854_v47, %v1183_v53  ;;  %v3846_v47 = vld [vmem:[#allocation15_spill] sm:$0xff] }
 0x3f4   :  { %v2858_v1 = vpop.eup %2857 }
 0x3f5   :  { %v1200_v17 = vsub.f32 %v3411_v25, %v2858_v1 }
 0x3f7   :  { %v1201_v57 = vmul.f32 %v1200_v17, %v1196_v6 }
 0x3f9   :  { %v3469_v18 = vadd.f32 %v2858_v1, %v1201_v57 }
 0x3fb   :  { %1204 = vrot.lane.b32.xlu1 %v3469_v18, %s2996_s28 }
 0x46d   :  { %v1205_v12 = vpop.permute.xlu1 %1204 }
 0x46e   :  { %v1207_v14 = vsel %vm522_vm0, %v3466_v45, %v1205_v12 }
 0x46f   :  { %v1208_v58 = vpack.c.bf16 %v1207_v14, %v1207_v14 }
 0x471   :  { %2706 = vmatmul.mubr.msk.bf16.vlgmr.msra.gmra.mxu0 %vm605_vm1, %v1208_v58  ;;  %2707 = vmatmul.mubr.msk.bf16.vlgmr.msra.gmra.mxu1 %vm605_vm1, %v1208_v58 }
 0x472   :  { %1303 = vmatpush1.bf16.msra.mxu0 %v3210_v33  ;;  %1344 = vmatpush1.bf16.msra.mxu1 %v3219_v36 }
 0x473   :  { %1304 = vmatprep.subr.bf16.mxu0 %v3316_v61  ;;  %1345 = vmatprep.subr.bf16.mxu1 %v3318_v44 }
 0x474   :  { %1326 = vmatprep.mubr.bf16.mxu0 %v3838_v27  ;;  %1367 = vmatprep.mubr.bf16.mxu1 %v3838_v27 }
 0x476   :  { %1305 = vmatpush1.bf16.msra.mxu0 %v3324_v26  ;;  %1346 = vmatpush1.bf16.msra.mxu1 %v3326_v9 }
 0x477   :  { %1306 = vmatprep.subr.bf16.mxu0 %v3330_v7  ;;  %1347 = vmatprep.subr.bf16.mxu1 %v3332_v10 }
 0x47a   :  { %1307 = vmatpush1.bf16.msra.mxu0 %v3338_v29  ;;  %1348 = vmatpush1.bf16.msra.mxu1 %v3340_v20 }
 0x47b   :  { %1308 = vmatprep.subr.bf16.mxu0 %v3344_v21  ;;  %1349 = vmatprep.subr.bf16.mxu1 %v3346_v0 }
 0x47e   :  { %1309 = vmatpush1.bf16.msra.mxu0 %v3350_v35  ;;  %1350 = vmatpush1.bf16.msra.mxu1 %v3352_v22 }
 0x47f   :  { %1429 = vmatprep.subr.bf16.mxu0 %v3077_v37  ;;  %1470 = vmatprep.subr.bf16.mxu1 %v3082_v42 }
 0x481   :  { %2708 = vmatmul.mubr.msk.bf16.vlgmr.msra.gmra.mxu0 %vm605_vm1, %v1208_v58  ;;  %2709 = vmatmul.mubr.msk.bf16.vlgmr.msra.gmra.mxu1 %vm605_vm1, %v1208_v58 }
 0x482   :  { %1430 = vmatpush1.bf16.msra.mxu0 %v3084_v43  ;;  %1471 = vmatpush1.bf16.msra.mxu1 %v3089_v49 }
 0x483   :  { %1431 = vmatprep.subr.bf16.mxu0 %v3087_v46  ;;  %1472 = vmatprep.subr.bf16.mxu1 %v3092_v50 }
 0x484   :  { %1453 = vmatprep.mubr.bf16.mxu0 %v3838_v27  ;;  %1494 = vmatprep.mubr.bf16.mxu1 %v3838_v27 }
 0x486   :  { %1432 = vmatpush1.bf16.msra.mxu0 %v3096_v51  ;;  %1473 = vmatpush1.bf16.msra.mxu1 %v3103_v55 }
 0x487   :  { %1433 = vmatprep.subr.bf16.mxu0 %v3099_v54  ;;  %1474 = vmatprep.subr.bf16.mxu1 %v3109_v59 }
 0x48a   :  { %1434 = vmatpush1.bf16.msra.mxu0 %v3112_v60  ;;  %1475 = vmatpush1.bf16.msra.mxu1 %v3118_v2 }
 0x48b   :  { %1435 = vmatprep.subr.bf16.mxu0 %v3115_v63  ;;  %1476 = vmatprep.subr.bf16.mxu1 %v3121_v3 }
 0x48e   :  { %1436 = vmatpush1.bf16.msra.mxu0 %v3125_v4  ;;  %1477 = vmatpush1.bf16.msra.mxu1 %v3130_v5 }
 0x48f   :  { %1511 = vmatprep.subr.bf16.mxu0 %v3181_v19  ;;  %1552 = vmatprep.subr.bf16.mxu1 %v3185_v23 }
 0x531   :  { %v1246_v25 = vpop.f32.mrf.mxu0  ;;  %v1287_v8 = vpop.f32.mrf.mxu1 }
 0x532   :  { %v1376_v52 = vadd.f32 %v1246_v25, %v3843_v48  ;;  %v1378_v34 = vadd.f32 %v1287_v8, %v3844_v15 }
 0x533   :  { %v1248_v31 = vpop.f32.mrf.mxu0  ;;  %v1289_v13 = vpop.f32.mrf.mxu1 }
 0x534   :  { %v1380_v38 = vmul.f32 0.5, %v1376_v52  ;;  %v1377_v62 = vadd.f32 %v1248_v31, %v3845_v40  ;;  %v1379_v30 = vadd.f32 %v1289_v13, %v3846_v47 }
 0x535   :  { %v1250_v32 = vpop.f32.mrf.mxu0  ;;  %v1291_v24 = vpop.f32.mrf.mxu1 }
 0x536   :  { %2859 = vtanh.f32 %v1380_v38  ;;  %v1384_v56 = vmul.f32 0.5, %v1377_v62 }
 0x537   :  { %v1251_v53 = vpop.f32.mrf.mxu0  ;;  %v1292_v16 = vpop.f32.mrf.mxu1 }
 0x538   :  { %2861 = vtanh.f32 %v1384_v56 }
 0x541   :  { %v1328_v1 = vpop.f32.mrf.mxu0  ;;  %v1369_v6 = vpop.f32.mrf.mxu1 }
 0x542   :  { %v1394_v17 = vadd.f32 %v1328_v1, %v3389_v28  ;;  %v1396_v1 = vadd.f32 %v1369_v6, %v3403_v39 }
 0x543   :  { %v2860_v57 = vpop.eup %2859  ;;  %v1330_v12 = vpop.f32.mrf.mxu0 }
 0x544   :  { %v1371_v14 = vpop.f32.mrf.mxu1  ;;  %v1382_v58 = vmul.f32 0.5, %v2860_v57  ;;  %v1398_v25 = vmul.f32 0.5, %v1394_v17  ;;  %v1395_v40 = vadd.f32 %v1330_v12, %v3394_v11 }
 0x545   :  { %v1332_v8 = vpop.f32.mrf.mxu0  ;;  %v2862_v62 = vpop.eup %2861  ;;  %v1397_v16 = vadd.f32 %v1371_v14, %v3399_v41 }
 0x546   :  { %v1373_v48 = vpop.f32.mrf.mxu1  ;;  %v1383_v52 = vadd.f32 0.5, %v1382_v58  ;;  %2863 = vtanh.f32 %v1398_v25  ;;  %v1402_v47 = vmul.f32 0.5, %v1395_v40  ;;  %v1386_v53 = vmul.f32 0.5, %v2862_v62  ;;  %v3847_v62 = vld [vmem:[#allocation14_spill] sm:$0xff] }
 0x547   :  { %v1333_v15 = vpop.f32.mrf.mxu0 }
 0x548   :  { %v1374_v31 = vpop.f32.mrf.mxu1  ;;  %v1388_v13 = vmul.f32 %v1383_v52, %v1379_v30  ;;  %v1387_v58 = vadd.f32 0.5, %v1386_v53 }
 0x54a   :  { %v1389_v38 = vadd.f32 %v1388_v13, %v1378_v34 }
 0x54c   :  { %2865 = vtanh.f32 %v1389_v38 }
 0x54d   :  { %2867 = vtanh.f32 %v1402_v47 }
 0x553   :  { %v2864_v32 = vpop.eup %2863 }
 0x554   :  { %v1400_v24 = vmul.f32 0.5, %v2864_v32  ;;  %v3848_v32 = vld [vmem:[#allocation17_spill] sm:$0xff] }
 0x556   :  { %v1401_v56 = vadd.f32 0.5, %v1400_v24 }
 0x558   :  { %v1406_v17 = vmul.f32 %v1401_v56, %v1397_v16 }
 0x559   :  { %v2866_v57 = vpop.eup %2865 }
 0x55a   :  { %v1407_v25 = vadd.f32 %v1406_v17, %v1396_v1  ;;  %v1391_v34 = vsub.f32 %v3466_v45, %v2866_v57  ;;  %v2868_v8 = vpop.eup %2867  ;;  %v3849_v1 = vld [vmem:[#allocation16_spill] sm:$0xff] }
 0x55b   :  { %v1404_v48 = vmul.f32 0.5, %v2868_v8 }
 0x55c   :  { %2869 = vtanh.f32 %v1407_v25  ;;  %v1392_v30 = vmul.f32 %v1391_v34, %v1387_v58 }
 0x55d   :  { %v1405_v15 = vadd.f32 0.5, %v1404_v48 }
 0x55e   :  { %v3524_v12 = vadd.f32 %v2866_v57, %v1392_v30  ;;  %v3850_v57 = vld [vmem:[#allocation19_spill] sm:$0xff] }
 0x569   :  { %v2870_v52 = vpop.eup %2869 }
 0x56a   :  { %v1409_v31 = vsub.f32 %v3469_v18, %v2870_v52 }
 0x56c   :  { %v1410_v14 = vmul.f32 %v1409_v31, %v1405_v15 }
 0x56e   :  { %v3527_v13 = vadd.f32 %v2870_v52, %v1410_v14 }
 0x570   :  { %1413 = vrot.lane.b32.xlu1 %v3527_v13, %s2996_s28 }
 0x5e2   :  { %v1414_v6 = vpop.permute.xlu1 %1413 }
 0x5e3   :  { %v1416_v45 = vsel %vm522_vm0, %v3524_v12, %v1414_v6 }
 0x5e4   :  { %v1417_v38 = vpack.c.bf16 %v1416_v45, %v1416_v45 }
 0x5e6   :  { %2710 = vmatmul.mubr.msk.bf16.vlgmr.msra.gmra.mxu0 %vm605_vm1, %v1417_v38  ;;  %2711 = vmatmul.mubr.msk.bf16.vlgmr.msra.gmra.mxu1 %vm605_vm1, %v1417_v38 }
 0x5e7   :  { %1512 = vmatpush1.bf16.msra.mxu0 %v3210_v33  ;;  %1553 = vmatpush1.bf16.msra.mxu1 %v3219_v36 }
 0x5e8   :  { %1513 = vmatprep.subr.bf16.mxu0 %v3316_v61  ;;  %1554 = vmatprep.subr.bf16.mxu1 %v3318_v44 }
 0x5e9   :  { %1535 = vmatprep.mubr.bf16.mxu0 %v3838_v27  ;;  %1576 = vmatprep.mubr.bf16.mxu1 %v3838_v27 }
 0x5eb   :  { %1514 = vmatpush1.bf16.msra.mxu0 %v3324_v26  ;;  %1555 = vmatpush1.bf16.msra.mxu1 %v3326_v9 }
 0x5ec   :  { %1515 = vmatprep.subr.bf16.mxu0 %v3330_v7  ;;  %1556 = vmatprep.subr.bf16.mxu1 %v3332_v10 }
 0x5ef   :  { %1516 = vmatpush1.bf16.msra.mxu0 %v3338_v29  ;;  %1557 = vmatpush1.bf16.msra.mxu1 %v3340_v20 }
 0x5f0   :  { %1517 = vmatprep.subr.bf16.mxu0 %v3344_v21  ;;  %1558 = vmatprep.subr.bf16.mxu1 %v3346_v0 }
 0x5f3   :  { %1518 = vmatpush1.bf16.msra.mxu0 %v3350_v35  ;;  %1559 = vmatpush1.bf16.msra.mxu1 %v3352_v22 }
 0x5f4   :  { %1638 = vmatprep.subr.bf16.mxu0 %v3077_v37  ;;  %1679 = vmatprep.subr.bf16.mxu1 %v3082_v42 }
 0x5f6   :  { %2712 = vmatmul.mubr.msk.bf16.vlgmr.msra.gmra.mxu0 %vm605_vm1, %v1417_v38  ;;  %2713 = vmatmul.mubr.msk.bf16.vlgmr.msra.gmra.mxu1 %vm605_vm1, %v1417_v38 }
 0x5f7   :  { %1639 = vmatpush1.bf16.msra.mxu0 %v3084_v43  ;;  %1680 = vmatpush1.bf16.msra.mxu1 %v3089_v49 }
 0x5f8   :  { %1640 = vmatprep.subr.bf16.mxu0 %v3087_v46  ;;  %1681 = vmatprep.subr.bf16.mxu1 %v3092_v50 }
 0x5f9   :  { %1662 = vmatprep.mubr.bf16.mxu0 %v3838_v27  ;;  %1703 = vmatprep.mubr.bf16.mxu1 %v3838_v27 }
 0x5fb   :  { %1641 = vmatpush1.bf16.msra.mxu0 %v3096_v51  ;;  %1682 = vmatpush1.bf16.msra.mxu1 %v3103_v55 }
 0x5fc   :  { %1642 = vmatprep.subr.bf16.mxu0 %v3099_v54  ;;  %1683 = vmatprep.subr.bf16.mxu1 %v3109_v59 }
 0x5ff   :  { %1643 = vmatpush1.bf16.msra.mxu0 %v3112_v60  ;;  %1684 = vmatpush1.bf16.msra.mxu1 %v3118_v2 }
 0x600   :  { %1644 = vmatprep.subr.bf16.mxu0 %v3115_v63  ;;  %1685 = vmatprep.subr.bf16.mxu1 %v3121_v3 }
 0x603   :  { %1645 = vmatpush1.bf16.msra.mxu0 %v3125_v4  ;;  %1686 = vmatpush1.bf16.msra.mxu1 %v3130_v5 }
 0x604   :  { %1720 = vmatprep.subr.bf16.mxu0 %v3181_v19  ;;  %1761 = vmatprep.subr.bf16.mxu1 %v3185_v23 }
 0x6a6   :  { %v1455_v18 = vpop.f32.mrf.mxu0  ;;  %v1496_v40 = vpop.f32.mrf.mxu1 }
 0x6a7   :  { %v1585_v47 = vadd.f32 %v1455_v18, %v3847_v62  ;;  %v1587_v24 = vadd.f32 %v1496_v40, %v3848_v32 }
 0x6a8   :  { %v1457_v53 = vpop.f32.mrf.mxu0  ;;  %v1498_v16 = vpop.f32.mrf.mxu1 }
 0x6a9   :  { %v1589_v56 = vmul.f32 0.5, %v1585_v47  ;;  %v1586_v17 = vadd.f32 %v1457_v53, %v3849_v1  ;;  %v1588_v58 = vadd.f32 %v1498_v16, %v3850_v57 }
 0x6aa   :  { %v1459_v25 = vpop.f32.mrf.mxu0  ;;  %v1500_v34 = vpop.f32.mrf.mxu1 }
 0x6ab   :  { %2871 = vtanh.f32 %v1589_v56  ;;  %v1593_v48 = vmul.f32 0.5, %v1586_v17 }
 0x6ac   :  { %v1460_v30 = vpop.f32.mrf.mxu0  ;;  %v1501_v8 = vpop.f32.mrf.mxu1 }
 0x6ad   :  { %2873 = vtanh.f32 %v1593_v48 }
 0x6b6   :  { %v1537_v52 = vpop.f32.mrf.mxu0  ;;  %v1578_v15 = vpop.f32.mrf.mxu1 }
 0x6b7   :  { %v1603_v31 = vadd.f32 %v1537_v52, %v3389_v28  ;;  %v1605_v52 = vadd.f32 %v1578_v15, %v3403_v39 }
 0x6b8   :  { %v2872_v14 = vpop.eup %2871  ;;  %v1539_v6 = vpop.f32.mrf.mxu0 }
 0x6b9   :  { %v1580_v45 = vpop.f32.mrf.mxu1  ;;  %v1591_v38 = vmul.f32 0.5, %v2872_v14  ;;  %v1607_v18 = vmul.f32 0.5, %v1603_v31  ;;  %v1604_v1 = vadd.f32 %v1539_v6, %v3394_v11 }
 0x6ba   :  { %v1541_v40 = vpop.f32.mrf.mxu0  ;;  %v2874_v17 = vpop.eup %2873  ;;  %v1606_v8 = vadd.f32 %v1580_v45, %v3399_v41 }
 0x6bb   :  { %v1582_v62 = vpop.f32.mrf.mxu1  ;;  %v1592_v47 = vadd.f32 0.5, %v1591_v38  ;;  %2875 = vtanh.f32 %v1607_v18  ;;  %v1611_v57 = vmul.f32 0.5, %v1604_v1  ;;  %v1595_v30 = vmul.f32 0.5, %v2874_v17  ;;  %v3851_v17 = vld [vmem:[#allocation18_spill] sm:$0xff] }
 0x6bc   :  { %v1542_v32 = vpop.f32.mrf.mxu0 }
 0x6bd   :  { %v1583_v53 = vpop.f32.mrf.mxu1  ;;  %v1597_v16 = vmul.f32 %v1592_v47, %v1588_v58  ;;  %v1596_v38 = vadd.f32 0.5, %v1595_v30 }
 0x6bf   :  { %v1598_v56 = vadd.f32 %v1597_v16, %v1587_v24 }
 0x6c1   :  { %2877 = vtanh.f32 %v1598_v56 }
 0x6c2   :  { %2879 = vtanh.f32 %v1611_v57 }
 0x6c8   :  { %v2876_v25 = vpop.eup %2875 }
 0x6c9   :  { %v1609_v34 = vmul.f32 0.5, %v2876_v25  ;;  %v3852_v25 = vld [vmem:[#allocation21_spill] sm:$0xff] }
 0x6cb   :  { %v1610_v48 = vadd.f32 0.5, %v1609_v34 }
 0x6cd   :  { %v1615_v31 = vmul.f32 %v1610_v48, %v1606_v8 }
 0x6ce   :  { %v2878_v14 = vpop.eup %2877 }
 0x6cf   :  { %v1616_v18 = vadd.f32 %v1615_v31, %v1605_v52  ;;  %v1600_v24 = vsub.f32 %v3524_v12, %v2878_v14  ;;  %v2880_v40 = vpop.eup %2879  ;;  %v3853_v52 = vld [vmem:[#allocation20_spill] sm:$0xff] }
 0x6d0   :  { %v1613_v62 = vmul.f32 0.5, %v2880_v40 }
 0x6d1   :  { %2881 = vtanh.f32 %v1616_v18  ;;  %v1601_v58 = vmul.f32 %v1600_v24, %v1596_v38 }
 0x6d2   :  { %v1614_v32 = vadd.f32 0.5, %v1613_v62 }
 0x6d3   :  { %v3582_v6 = vadd.f32 %v2878_v14, %v1601_v58  ;;  %v3854_v14 = vld [vmem:[#allocation23_spill] sm:$0xff] }
 0x6de   :  { %v2882_v47 = vpop.eup %2881 }
 0x6df   :  { %v1618_v53 = vsub.f32 %v3527_v13, %v2882_v47 }
 0x6e1   :  { %v1619_v45 = vmul.f32 %v1618_v53, %v1614_v32 }
 0x6e3   :  { %v3585_v16 = vadd.f32 %v2882_v47, %v1619_v45 }
 0x6e5   :  { %1622 = vrot.lane.b32.xlu0 %v3585_v16, %s2996_s28 }
 0x757   :  { %v1623_v15 = vpop.permute.xlu0 %1622 }
 0x758   :  { %v1625_v12 = vsel %vm522_vm0, %v3582_v6, %v1623_v15 }
 0x759   :  { %v1626_v56 = vpack.c.bf16 %v1625_v12, %v1625_v12 }
 0x75b   :  { %2714 = vmatmul.mubr.msk.bf16.vlgmr.msra.gmra.mxu0 %vm605_vm1, %v1626_v56  ;;  %2715 = vmatmul.mubr.msk.bf16.vlgmr.msra.gmra.mxu1 %vm605_vm1, %v1626_v56 }
 0x75c   :  { %1721 = vmatpush1.bf16.msra.mxu0 %v3210_v33  ;;  %1762 = vmatpush1.bf16.msra.mxu1 %v3219_v36 }
 0x75d   :  { %1722 = vmatprep.subr.bf16.mxu0 %v3316_v61  ;;  %1763 = vmatprep.subr.bf16.mxu1 %v3318_v44 }
 0x75e   :  { %1744 = vmatprep.mubr.bf16.mxu0 %v3838_v27  ;;  %1785 = vmatprep.mubr.bf16.mxu1 %v3838_v27 }
 0x760   :  { %1723 = vmatpush1.bf16.msra.mxu0 %v3324_v26  ;;  %1764 = vmatpush1.bf16.msra.mxu1 %v3326_v9 }
 0x761   :  { %1724 = vmatprep.subr.bf16.mxu0 %v3330_v7  ;;  %1765 = vmatprep.subr.bf16.mxu1 %v3332_v10 }
 0x764   :  { %1725 = vmatpush1.bf16.msra.mxu0 %v3338_v29  ;;  %1766 = vmatpush1.bf16.msra.mxu1 %v3340_v20 }
 0x765   :  { %1726 = vmatprep.subr.bf16.mxu0 %v3344_v21  ;;  %1767 = vmatprep.subr.bf16.mxu1 %v3346_v0 }
 0x768   :  { %1727 = vmatpush1.bf16.msra.mxu0 %v3350_v35  ;;  %1768 = vmatpush1.bf16.msra.mxu1 %v3352_v22 }
 0x769   :  { %1847 = vmatprep.subr.bf16.mxu0 %v3077_v37  ;;  %1888 = vmatprep.subr.bf16.mxu1 %v3082_v42 }
 0x76b   :  { %2716 = vmatmul.mubr.msk.bf16.vlgmr.msra.gmra.mxu0 %vm605_vm1, %v1626_v56  ;;  %2717 = vmatmul.mubr.msk.bf16.vlgmr.msra.gmra.mxu1 %vm605_vm1, %v1626_v56 }
 0x76c   :  { %1848 = vmatpush1.bf16.msra.mxu0 %v3084_v43  ;;  %1889 = vmatpush1.bf16.msra.mxu1 %v3089_v49 }
 0x76d   :  { %1849 = vmatprep.subr.bf16.mxu0 %v3087_v46  ;;  %1890 = vmatprep.subr.bf16.mxu1 %v3092_v50 }
 0x76e   :  { %1871 = vmatprep.mubr.bf16.mxu0 %v3838_v27  ;;  %1912 = vmatprep.mubr.bf16.mxu1 %v3838_v27 }
 0x770   :  { %1850 = vmatpush1.bf16.msra.mxu0 %v3096_v51  ;;  %1891 = vmatpush1.bf16.msra.mxu1 %v3103_v55 }
 0x771   :  { %1851 = vmatprep.subr.bf16.mxu0 %v3099_v54  ;;  %1892 = vmatprep.subr.bf16.mxu1 %v3109_v59 }
 0x774   :  { %1852 = vmatpush1.bf16.msra.mxu0 %v3112_v60  ;;  %1893 = vmatpush1.bf16.msra.mxu1 %v3118_v2 }
 0x775   :  { %1853 = vmatprep.subr.bf16.mxu0 %v3115_v63  ;;  %1894 = vmatprep.subr.bf16.mxu1 %v3121_v3 }
 0x778   :  { %1854 = vmatpush1.bf16.msra.mxu0 %v3125_v4  ;;  %1895 = vmatpush1.bf16.msra.mxu1 %v3130_v5 }
 0x779   :  { %1929 = vmatprep.subr.bf16.mxu0 %v3181_v19  ;;  %1970 = vmatprep.subr.bf16.mxu1 %v3185_v23 }
 0x81b   :  { %v1664_v13 = vpop.f32.mrf.mxu0  ;;  %v1705_v1 = vpop.f32.mrf.mxu1 }
 0x81c   :  { %v1794_v57 = vadd.f32 %v1664_v13, %v3851_v17  ;;  %v1796_v34 = vadd.f32 %v1705_v1, %v3852_v25 }
 0x81d   :  { %v1666_v30 = vpop.f32.mrf.mxu0  ;;  %v1707_v8 = vpop.f32.mrf.mxu1 }
 0x81e   :  { %v1798_v48 = vmul.f32 0.5, %v1794_v57  ;;  %v1795_v31 = vadd.f32 %v1666_v30, %v3853_v52  ;;  %v1797_v38 = vadd.f32 %v1707_v8, %v3854_v14 }
 0x81f   :  { %v1668_v18 = vpop.f32.mrf.mxu0  ;;  %v1709_v24 = vpop.f32.mrf.mxu1 }
 0x820   :  { %2883 = vtanh.f32 %v1798_v48  ;;  %v1802_v62 = vmul.f32 0.5, %v1795_v31 }
 0x821   :  { %v1669_v58 = vpop.f32.mrf.mxu0  ;;  %v1710_v40 = vpop.f32.mrf.mxu1 }
 0x822   :  { %2885 = vtanh.f32 %v1802_v62 }
 0x82b   :  { %v1746_v47 = vpop.f32.mrf.mxu0  ;;  %v1787_v32 = vpop.f32.mrf.mxu1 }
 0x82c   :  { %v1812_v53 = vadd.f32 %v1746_v47, %v3389_v28  ;;  %v1814_v47 = vadd.f32 %v1787_v32, %v3403_v39 }
 0x82d   :  { %v2884_v45 = vpop.eup %2883  ;;  %v1748_v15 = vpop.f32.mrf.mxu0 }
 0x82e   :  { %v1789_v12 = vpop.f32.mrf.mxu1  ;;  %v1800_v56 = vmul.f32 0.5, %v2884_v45  ;;  %v1816_v13 = vmul.f32 0.5, %v1812_v53  ;;  %v1813_v52 = vadd.f32 %v1748_v15, %v3394_v11 }
 0x82f   :  { %v1750_v1 = vpop.f32.mrf.mxu0  ;;  %v2886_v31 = vpop.eup %2885  ;;  %v1815_v40 = vadd.f32 %v1789_v12, %v3399_v41 }
 0x830   :  { %v1791_v17 = vpop.f32.mrf.mxu1  ;;  %v1801_v57 = vadd.f32 0.5, %v1800_v56  ;;  %2887 = vtanh.f32 %v1816_v13  ;;  %v1820_v14 = vmul.f32 0.5, %v1813_v52  ;;  %v1804_v58 = vmul.f32 0.5, %v2886_v31 }
 0x831   :  { %v1751_v25 = vpop.f32.mrf.mxu0 }
 0x832   :  { %v1792_v30 = vpop.f32.mrf.mxu1  ;;  %v1806_v8 = vmul.f32 %v1801_v57, %v1797_v38  ;;  %v1805_v56 = vadd.f32 0.5, %v1804_v58 }
 0x834   :  { %v1807_v48 = vadd.f32 %v1806_v8, %v1796_v34 }
 0x836   :  { %2889 = vtanh.f32 %v1807_v48 }
 0x837   :  { %2891 = vtanh.f32 %v1820_v14 }
 0x83d   :  { %v2888_v18 = vpop.eup %2887 }
 0x83e   :  { %v1818_v24 = vmul.f32 0.5, %v2888_v18 }
 0x840   :  { %v1819_v62 = vadd.f32 0.5, %v1818_v24 }
 0x842   :  { %v1824_v53 = vmul.f32 %v1819_v62, %v1815_v40 }
 0x843   :  { %v2890_v45 = vpop.eup %2889 }
 0x844   :  { %v1825_v13 = vadd.f32 %v1824_v53, %v1814_v47  ;;  %v1809_v34 = vsub.f32 %v3582_v6, %v2890_v45  ;;  %v2892_v1 = vpop.eup %2891 }
 0x845   :  { %v1822_v17 = vmul.f32 0.5, %v2892_v1 }
 0x846   :  { %2893 = vtanh.f32 %v1825_v13  ;;  %v1810_v38 = vmul.f32 %v1809_v34, %v1805_v56 }
 0x847   :  { %v1823_v25 = vadd.f32 0.5, %v1822_v17 }
 0x848   :  { %v3640_v15 = vadd.f32 %v2890_v45, %v1810_v38 }
 0x853   :  { %v2894_v57 = vpop.eup %2893 }
 0x854   :  { %v1827_v30 = vsub.f32 %v3585_v16, %v2894_v57 }
 0x856   :  { %v1828_v12 = vmul.f32 %v1827_v30, %v1823_v25 }
 0x858   :  { %v3643_v8 = vadd.f32 %v2894_v57, %v1828_v12 }
 0x85a   :  { %1831 = vrot.lane.b32.xlu1 %v3643_v8, %s2996_s28 }
 0x8cc   :  { %v1832_v32 = vpop.permute.xlu1 %1831 }
 0x8cd   :  { %v1834_v6 = vsel %vm522_vm0, %v3640_v15, %v1832_v32 }
 0x8ce   :  { %v1835_v48 = vpack.c.bf16 %v1834_v6, %v1834_v6 }
 0x8d0   :  { %2718 = vmatmul.mubr.msk.bf16.vlgmr.msra.gmra.mxu0 %vm605_vm1, %v1835_v48  ;;  %2719 = vmatmul.mubr.msk.bf16.vlgmr.msra.gmra.mxu1 %vm605_vm1, %v1835_v48 }
 0x8d1   :  { %1930 = vmatpush1.bf16.msra.mxu0 %v3210_v33  ;;  %1971 = vmatpush1.bf16.msra.mxu1 %v3219_v36 }
 0x8d2   :  { %1931 = vmatprep.subr.bf16.mxu0 %v3316_v61  ;;  %1972 = vmatprep.subr.bf16.mxu1 %v3318_v44 }
 0x8d3   :  { %1953 = vmatprep.mubr.bf16.mxu0 %v3838_v27  ;;  %1994 = vmatprep.mubr.bf16.mxu1 %v3838_v27 }
 0x8d5   :  { %1932 = vmatpush1.bf16.msra.mxu0 %v3324_v26  ;;  %1973 = vmatpush1.bf16.msra.mxu1 %v3326_v9 }
 0x8d6   :  { %1933 = vmatprep.subr.bf16.mxu0 %v3330_v7  ;;  %1974 = vmatprep.subr.bf16.mxu1 %v3332_v10 }
 0x8d9   :  { %1934 = vmatpush1.bf16.msra.mxu0 %v3338_v29  ;;  %1975 = vmatpush1.bf16.msra.mxu1 %v3340_v20 }
 0x8da   :  { %1935 = vmatprep.subr.bf16.mxu0 %v3344_v21  ;;  %1976 = vmatprep.subr.bf16.mxu1 %v3346_v0 }
 0x8dd   :  { %1936 = vmatpush1.bf16.msra.mxu0 %v3350_v35  ;;  %1977 = vmatpush1.bf16.msra.mxu1 %v3352_v22 }
 0x8de   :  { %2056 = vmatprep.subr.bf16.mxu0 %v3077_v37  ;;  %2097 = vmatprep.subr.bf16.mxu1 %v3082_v42 }
 0x8e0   :  { %2720 = vmatmul.mubr.msk.bf16.vlgmr.msra.gmra.mxu0 %vm605_vm1, %v1835_v48  ;;  %2721 = vmatmul.mubr.msk.bf16.vlgmr.msra.gmra.mxu1 %vm605_vm1, %v1835_v48 }
 0x8e1   :  { %2057 = vmatpush1.bf16.msra.mxu0 %v3084_v43  ;;  %2098 = vmatpush1.bf16.msra.mxu1 %v3089_v49  ;;  %v3855_v43 = vld [vmem:[#allocation22_spill] sm:$0xff]  ;;  %v3856_v49 = vld [vmem:[#allocation25_spill] sm:$0xff] }
 0x8e2   :  { %2058 = vmatprep.subr.bf16.mxu0 %v3087_v46  ;;  %2099 = vmatprep.subr.bf16.mxu1 %v3092_v50 }
 0x8e3   :  { %2080 = vmatprep.mubr.bf16.mxu0 %v3838_v27  ;;  %2121 = vmatprep.mubr.bf16.mxu1 %v3838_v27 }
 0x8e5   :  { %2059 = vmatpush1.bf16.msra.mxu0 %v3096_v51  ;;  %2100 = vmatpush1.bf16.msra.mxu1 %v3103_v55 }
 0x8e6   :  { %2060 = vmatprep.subr.bf16.mxu0 %v3099_v54  ;;  %2101 = vmatprep.subr.bf16.mxu1 %v3109_v59  ;;  %v3857_v59 = vld [vmem:[#allocation24_spill] sm:$0xff] }
 0x8e9   :  { %2061 = vmatpush1.bf16.msra.mxu0 %v3112_v60  ;;  %2102 = vmatpush1.bf16.msra.mxu1 %v3118_v2 }
 0x8ea   :  { %2062 = vmatprep.subr.bf16.mxu0 %v3115_v63  ;;  %2103 = vmatprep.subr.bf16.mxu1 %v3121_v3  ;;  %v3858_v63 = vld [vmem:[#allocation27_spill] sm:$0xff] }
 0x8ed   :  { %2063 = vmatpush1.bf16.msra.mxu0 %v3125_v4  ;;  %2104 = vmatpush1.bf16.msra.mxu1 %v3130_v5 }
 0x8ee   :  { %2138 = vmatprep.subr.bf16.mxu0 %v3181_v19  ;;  %2179 = vmatprep.subr.bf16.mxu1 %v3185_v23 }
 0x990   :  { %v1873_v37 = vpop.f32.mrf.mxu0  ;;  %v1914_v42 = vpop.f32.mrf.mxu1 }
 0x991   :  { %v2003_v46 = vadd.f32 %v1873_v37, %v3855_v43  ;;  %v2005_v50 = vadd.f32 %v1914_v42, %v3856_v49 }
 0x992   :  { %v1875_v51 = vpop.f32.mrf.mxu0  ;;  %v1916_v54 = vpop.f32.mrf.mxu1 }
 0x993   :  { %v2007_v55 = vmul.f32 0.5, %v2003_v46  ;;  %v2004_v60 = vadd.f32 %v1875_v51, %v3857_v59  ;;  %v2006_v2 = vadd.f32 %v1916_v54, %v3858_v63 }
 0x994   :  { %v1877_v3 = vpop.f32.mrf.mxu0  ;;  %v1918_v4 = vpop.f32.mrf.mxu1 }
 0x995   :  { %2895 = vtanh.f32 %v2007_v55  ;;  %v2011_v52 = vmul.f32 0.5, %v2004_v60 }
 0x996   :  { %v1878_v5 = vpop.f32.mrf.mxu0  ;;  %v1919_v16 = vpop.f32.mrf.mxu1 }
 0x997   :  { %2897 = vtanh.f32 %v2011_v52 }
 0x9a0   :  { %v1955_v31 = vpop.f32.mrf.mxu0  ;;  %v1996_v14 = vpop.f32.mrf.mxu1 }
 0x9a1   :  { %v2021_v18 = vadd.f32 %v1955_v31, %v3389_v28  ;;  %v2023_v37 = vadd.f32 %v1996_v14, %v3403_v39 }
 0x9a2   :  { %v2896_v24 = vpop.eup %2895  ;;  %v1957_v58 = vpop.f32.mrf.mxu0 }
 0x9a3   :  { %v1998_v40 = vpop.f32.mrf.mxu1  ;;  %v2009_v62 = vmul.f32 0.5, %v2896_v24  ;;  %v2025_v47 = vmul.f32 0.5, %v2021_v18  ;;  %v2022_v17 = vadd.f32 %v1957_v58, %v3394_v11 }
 0x9a4   :  { %v1959_v53 = vpop.f32.mrf.mxu0  ;;  %v2898_v57 = vpop.eup %2897  ;;  %v2024_v6 = vadd.f32 %v1998_v40, %v3399_v41 }
 0x9a5   :  { %v2000_v45 = vpop.f32.mrf.mxu1  ;;  %v2010_v56 = vadd.f32 0.5, %v2009_v62  ;;  %2899 = vtanh.f32 %v2025_v47  ;;  %v2029_v25 = vmul.f32 0.5, %v2022_v17  ;;  %v2013_v32 = vmul.f32 0.5, %v2898_v57 }
 0x9a6   :  { %v1960_v13 = vpop.f32.mrf.mxu0 }
 0x9a7   :  { %v2001_v34 = vpop.f32.mrf.mxu1  ;;  %v2015_v38 = vmul.f32 %v2010_v56, %v2006_v2  ;;  %v2014_v46 = vadd.f32 0.5, %v2013_v32 }
 0x9a9   :  { %v2016_v1 = vadd.f32 %v2015_v38, %v2005_v50 }
 0x9ab   :  { %2901 = vtanh.f32 %v2016_v1 }
 0x9ac   :  { %2903 = vtanh.f32 %v2029_v25 }
 0x9b2   :  { %v2900_v30 = vpop.eup %2899 }
 0x9b3   :  { %v2027_v12 = vmul.f32 0.5, %v2900_v30 }
 0x9b5   :  { %v2028_v48 = vadd.f32 0.5, %v2027_v12 }
 0x9b7   :  { %v2033_v42 = vmul.f32 %v2028_v48, %v2024_v6 }
 0x9b8   :  { %v2902_v43 = vpop.eup %2901 }
 0x9b9   :  { %v2034_v49 = vadd.f32 %v2033_v42, %v2023_v37  ;;  %v2018_v50 = vsub.f32 %v3640_v15, %v2902_v43  ;;  %v2904_v55 = vpop.eup %2903 }
 0x9ba   :  { %v2031_v59 = vmul.f32 0.5, %v2904_v55 }
 0x9bb   :  { %2905 = vtanh.f32 %v2034_v49  ;;  %v2019_v51 = vmul.f32 %v2018_v50, %v2014_v46 }
 0x9bc   :  { %v2032_v63 = vadd.f32 0.5, %v2031_v59 }
 0x9bd   :  { %v3698_v54 = vadd.f32 %v2902_v43, %v2019_v51 }
 0x9c8   :  { %v2906_v60 = vpop.eup %2905 }
 0x9c9   :  { %v2036_v2 = vsub.f32 %v3643_v8, %v2906_v60 }
 0x9cb   :  { %v2037_v3 = vmul.f32 %v2036_v2, %v2032_v63 }
 0x9cd   :  { %v3701_v4 = vadd.f32 %v2906_v60, %v2037_v3 }
 0x9cf   :  { %2040 = vrot.lane.b32.xlu0 %v3701_v4, %s2996_s28 }
 0xa41   :  { %v2041_v5 = vpop.permute.xlu0 %2040 }
 0xa42   :  { %v2043_v15 = vsel %vm522_vm0, %v3698_v54, %v2041_v5 }
 0xa43   :  { %v2044_v16 = vpack.c.bf16 %v2043_v15, %v2043_v15 }
 0xa45   :  { %2722 = vmatmul.mubr.msk.bf16.vlgmr.msra.gmra.mxu0 %vm605_vm1, %v2044_v16  ;;  %2723 = vmatmul.mubr.msk.bf16.vlgmr.msra.gmra.mxu1 %vm605_vm1, %v2044_v16 }
 0xa46   :  { %2139 = vmatpush1.bf16.msra.mxu0 %v3210_v33  ;;  %2180 = vmatpush1.bf16.msra.mxu1 %v3219_v36 }
 0xa47   :  { %2140 = vmatprep.subr.bf16.mxu0 %v3316_v61  ;;  %2181 = vmatprep.subr.bf16.mxu1 %v3318_v44 }
 0xa48   :  { %2162 = vmatprep.mubr.bf16.mxu0 %v3838_v27  ;;  %2203 = vmatprep.mubr.bf16.mxu1 %v3838_v27 }
 0xa4a   :  { %2141 = vmatpush1.bf16.msra.mxu0 %v3324_v26  ;;  %2182 = vmatpush1.bf16.msra.mxu1 %v3326_v9 }
 0xa4b   :  { %2142 = vmatprep.subr.bf16.mxu0 %v3330_v7  ;;  %2183 = vmatprep.subr.bf16.mxu1 %v3332_v10 }
 0xa4e   :  { %2143 = vmatpush1.bf16.msra.mxu0 %v3338_v29  ;;  %2184 = vmatpush1.bf16.msra.mxu1 %v3340_v20 }
 0xa4f   :  { %2144 = vmatprep.subr.bf16.mxu0 %v3344_v21  ;;  %2185 = vmatprep.subr.bf16.mxu1 %v3346_v0 }
 0xa52   :  { %2145 = vmatpush1.bf16.msra.mxu0 %v3350_v35  ;;  %2186 = vmatpush1.bf16.msra.mxu1 %v3352_v22 }
 0xa53   :  { %2265 = vmatprep.subr.bf16.mxu0 %v3181_v19  ;;  %2306 = vmatprep.subr.bf16.mxu1 %v3185_v23 }
 0xa55   :  { %2724 = vmatmul.mubr.msk.bf16.vlgmr.msra.gmra.mxu0 %vm605_vm1, %v2044_v16  ;;  %2725 = vmatmul.mubr.msk.bf16.vlgmr.msra.gmra.mxu1 %vm605_vm1, %v2044_v16 }
 0xa56   :  { %2266 = vmatpush1.bf16.msra.mxu0 %v3210_v33  ;;  %2307 = vmatpush1.bf16.msra.mxu1 %v3219_v36  ;;  %v3859_v33 = vld [vmem:[#allocation26_spill] sm:$0xff] }
 0xa57   :  { %2267 = vmatprep.subr.bf16.mxu0 %v3316_v61  ;;  %2308 = vmatprep.subr.bf16.mxu1 %v3318_v44  ;;  %v3860_v61 = vld [vmem:[#allocation29_spill] sm:$0xff] }
 0xa58   :  { %2289 = vmatprep.mubr.bf16.mxu0 %v3838_v27  ;;  %2330 = vmatprep.mubr.bf16.mxu1 %v3838_v27 }
 0xa5a   :  { %2268 = vmatpush1.bf16.msra.mxu0 %v3324_v26  ;;  %2309 = vmatpush1.bf16.msra.mxu1 %v3326_v9 }
 0xa5b   :  { %2269 = vmatprep.subr.bf16.mxu0 %v3330_v7  ;;  %2310 = vmatprep.subr.bf16.mxu1 %v3332_v10  ;;  %v3861_v10 = vld [vmem:[#allocation28_spill] sm:$0xff] }
 0xa5e   :  { %2270 = vmatpush1.bf16.msra.mxu0 %v3338_v29  ;;  %2311 = vmatpush1.bf16.msra.mxu1 %v3340_v20  ;;  %v3862_v29 = vld [vmem:[#allocation30_spill] sm:$0xff] }
 0xa5f   :  { %2271 = vmatprep.subr.bf16.mxu0 %v3344_v21  ;;  %2312 = vmatprep.subr.bf16.mxu1 %v3346_v0 }
 0xa62   :  { %2272 = vmatpush1.bf16.msra.mxu0 %v3350_v35  ;;  %2313 = vmatpush1.bf16.msra.mxu1 %v3352_v22 }
 0xb05   :  { %v2082_v19 = vpop.f32.mrf.mxu0  ;;  %v2123_v23 = vpop.f32.mrf.mxu1 }
 0xb06   :  { %v2212_v36 = vadd.f32 %v2082_v19, %v3859_v33  ;;  %v2214_v44 = vadd.f32 %v2123_v23, %v3860_v61  ;;  %v2998_v23 = vmov 0.0   ;;  %v2358_v33 = vld [vmem:[%s3805_s5 + $0x8] sm:$0xff] }
 0xb07   :  { %v2084_v26 = vpop.f32.mrf.mxu0  ;;  %v2125_v9 = vpop.f32.mrf.mxu1  ;;  %2744 = vmatprep.subr.mxu0 %v2998_v23  ;;  %2755 = vmatprep.subr.mxu1 %v2998_v23  ;;  %v2443_v61 = vld [vmem:[%s3807_s7 + $0x8] sm:$0xff] }
 0xb08   :  { %v2216_v7 = vmul.f32 0.5, %v2212_v36  ;;  %v2213_v27 = vadd.f32 %v2084_v26, %v3861_v10  ;;  %v2215_v20 = vadd.f32 %v2125_v9, %v3862_v29  ;;  %v2357_v36 = vld [vmem:[%s3805_s5] sm:$0xff] }
 0xb09   :  { %v2086_v21 = vpop.f32.mrf.mxu0  ;;  %v2127_v8 = vpop.f32.mrf.mxu1 }
 0xb0a   :  { %2907 = vtanh.f32 %v2216_v7  ;;  %v2220_v52 = vmul.f32 0.5, %v2213_v27 }
 0xb0b   :  { %v2087_v0 = vpop.f32.mrf.mxu0  ;;  %v2128_v35 = vpop.f32.mrf.mxu1 }
 0xb0c   :  { %2909 = vtanh.f32 %v2220_v52 }
 0xb15   :  { %v2164_v22 = vpop.f32.mrf.mxu0  ;;  %v2205_v31 = vpop.f32.mrf.mxu1 }
 0xb16   :  { %v2230_v14 = vadd.f32 %v2164_v22, %v3389_v28  ;;  %v2232_v48 = vadd.f32 %v2205_v31, %v3403_v39 }
 0xb17   :  { %v2908_v18 = vpop.eup %2907  ;;  %v2166_v24 = vpop.f32.mrf.mxu0 }
 0xb18   :  { %v2207_v58 = vpop.f32.mrf.mxu1  ;;  %v2218_v40 = vmul.f32 0.5, %v2908_v18  ;;  %v2234_v62 = vmul.f32 0.5, %v2230_v14  ;;  %v2231_v1 = vadd.f32 %v2166_v24, %v3394_v11 }
 0xb19   :  { %v2168_v47 = vpop.f32.mrf.mxu0  ;;  %v2910_v17 = vpop.eup %2909  ;;  %v2233_v32 = vadd.f32 %v2207_v58, %v3399_v41 }
 0xb1a   :  { %v2209_v53 = vpop.f32.mrf.mxu1  ;;  %v2219_v45 = vadd.f32 0.5, %v2218_v40  ;;  %2911 = vtanh.f32 %v2234_v62  ;;  %v2238_v57 = vmul.f32 0.5, %v2231_v1  ;;  %v2222_v12 = vmul.f32 0.5, %v2910_v17  ;;  %v2526_v1 = vld [vmem:[%s3809_s9] sm:$0xff]  ;;  %s2965_s9 = scalar_lea.vmem %s2617_s20, 32 }
 0xb1b   :  { %v2169_v56 = vpop.f32.mrf.mxu0  ;;  %v2730_v17 = vld [vmem:[%s3808_s8] ss:$0 sm:$0xff]  ;;  %p2966_p10 = scmp.ne.s32.totalorder %s2617_s20, %s2965_s9  ;;  %p2971_p12 = scmp.lt.s32.totalorder %s2965_s9, %s2965_s9 }
 0xb1c   :  { %v2210_v13 = vpop.f32.mrf.mxu1  ;;  %v2224_v34 = vmul.f32 %v2219_v45, %v2215_v20  ;;  %v2223_v43 = vadd.f32 0.5, %v2222_v12 }
 0xb1d   :  { %p2972_p13 = por %p2971_p12, %p2970_p11 }
 0xb1e   :  { %v2225_v38 = vadd.f32 %v2224_v34, %v2214_v44 }
 0xb1f   :  { %p2973_p0 = pnand %p2972_p13, %p2966_p10 }
 0xb20   :  { %2913 = vtanh.f32 %v2225_v38 }
 0xb21   :  { %2915 = vtanh.f32 %v2238_v57 }
 0xb27   :  { %v2912_v25 = vpop.eup %2911 }
 0xb28   :  { %v2236_v30 = vmul.f32 0.5, %v2912_v25 }
 0xb2a   :  { %v2237_v6 = vadd.f32 0.5, %v2236_v30 }
 0xb2c   :  { %v2242_v37 = vmul.f32 %v2237_v6, %v2233_v32  ;;  %v2732_v32 = vld [vmem:[%s3810_s10] ss:$0 sm:$0xff] }
 0xb2d   :  { %v2914_v42 = vpop.eup %2913 }
 0xb2e   :  { %v2243_v46 = vadd.f32 %v2242_v37, %v2232_v48  ;;  %v2227_v49 = vsub.f32 %v3698_v54, %v2914_v42  ;;  %v2916_v55 = vpop.eup %2915  ;;  %v2360_v54 = vld [vmem:[%s3805_s5 + $0x18] sm:$0xff] }
 0xb2f   :  { %v2240_v59 = vmul.f32 0.5, %v2916_v55 }
 0xb30   :  { %2917 = vtanh.f32 %v2243_v46  ;;  %v2228_v50 = vmul.f32 %v2227_v49, %v2223_v43 }
 0xb31   :  { %v2241_v63 = vadd.f32 0.5, %v2240_v59 }
 0xb32   :  { %v2229_v51 = vadd.f32 %v2914_v42, %v2228_v50 }
 0xb3d   :  { %v2918_v60 = vpop.eup %2917 }
 0xb3e   :  { %v2245_v2 = vsub.f32 %v3701_v4, %v2918_v60  ;;  %v2359_v4 = vld [vmem:[%s3805_s5 + $0x10] sm:$0xff] }
 0xb40   :  { %v2246_v3 = vmul.f32 %v2245_v2, %v2241_v63 }
 0xb42   :  { %v2247_v5 = vadd.f32 %v2918_v60, %v2246_v3 }
 0xb44   :  { %2249 = vrot.lane.b32.xlu1 %v2247_v5, %s2996_s28 }
 0xbb6   :  { %v2250_v15 = vpop.permute.xlu1 %2249 }
 0xbb7   :  { %v2252_v16 = vsel %vm522_vm0, %v2229_v51, %v2250_v15 }
 0xbb8   :  { %v2253_v19 = vpack.c.bf16 %v2252_v16, %v2252_v16 }
 0xbba   :  { %2726 = vmatmul.mubr.msk.bf16.vlgmr.msra.gmra.mxu0 %vm605_vm1, %v2253_v19  ;;  %2727 = vmatmul.mubr.msk.bf16.vlgmr.msra.gmra.mxu1 %vm605_vm1, %v2253_v19 }
 0xbbb   :  { %2752 = vmatprep.mubr.msk.f32.mxu0 %vm2999_vm2, %v2998_v23  ;;  %2745 = vmatpush3.msra.mxu0 %v2360_v54 }
 0xbbc   :  { %2746 = vmatprep.subr.mxu0 %v2998_v23  ;;  %2759 = vmatprep.mubr.msk.f32.mxu1 %vm2999_vm2, %v2998_v23 }
 0xbbd   :  { %2747 = vmatpush3.msra.mxu0 %v2359_v4  ;;  %2756 = vmatpush3.msra.mxu1 %v2443_v61 }
 0xbbe   :  { %2748 = vmatprep.subr.mxu0 %v2998_v23  ;;  %2757 = vmatprep.subr.mxu1 %v2998_v23 }
 0xbbf   :  { %2749 = vmatpush3.msra.mxu0 %v2358_v33 }
 0xbc0   :  { %2750 = vmatprep.subr.mxu0 %v2998_v23 }
 0xbc1   :  { %2751 = vmatpush3.msra.mxu0 %v2357_v36 }
 0xbc2   :  { %2762 = vmatprep.subr.mxu0 %v2998_v23 }
 0xc7a   :  { %v2291_v44 = vpop.f32.mrf.mxu0  ;;  %v2332_v26 = vpop.f32.mrf.mxu1 }
 0xc7b   :  { %v2339_v9 = vadd.f32 %v2291_v44, %v3389_v28  ;;  %v2341_v18 = vadd.f32 %v2332_v26, %v3403_v39 }
 0xc7c   :  { %v2293_v7 = vpop.f32.mrf.mxu0  ;;  %v2334_v10 = vpop.f32.mrf.mxu1 }
 0xc7d   :  { %v2343_v27 = vmul.f32 0.5, %v2339_v9  ;;  %v2340_v0 = vadd.f32 %v2293_v7, %v3394_v11  ;;  %v2342_v31 = vadd.f32 %v2334_v10, %v3399_v41  ;;  %v2442_v11 = vld [vmem:[%s3807_s7] sm:$0xff] }
 0xc7e   :  { %v2295_v29 = vpop.f32.mrf.mxu0  ;;  %v2336_v20 = vpop.f32.mrf.mxu1  ;;  %2758 = vmatpush3.msra.mxu1 %v2442_v11  ;;  %v2728_v41 = vld [vmem:[%s3806_s6] ss:$0 sm:$0xff] }
 0xc7f   :  { %2919 = vtanh.f32 %v2343_v27  ;;  %v2347_v35 = vmul.f32 0.5, %v2340_v0 }
 0xc80   :  { %v2296_v21 = vpop.f32.mrf.mxu0  ;;  %v2337_v8 = vpop.f32.mrf.mxu1 }
 0xc81   :  { %2921 = vtanh.f32 %v2347_v35 }
 0xc8c   :  { %v2920_v52 = vpop.eup %2919 }
 0xc8d   :  { %v2345_v22 = vmul.f32 0.5, %v2920_v52 }
 0xc8e   :  { %v2922_v58 = vpop.eup %2921 }
 0xc8f   :  { %v2346_v14 = vadd.f32 0.5, %v2345_v22  ;;  %v2349_v40 = vmul.f32 0.5, %v2922_v58 }
 0xc91   :  { %v2351_v28 = vmul.f32 %v2346_v14, %v2342_v31  ;;  %v2350_v47 = vadd.f32 0.5, %v2349_v40 }
 0xc93   :  { %v2352_v24 = vadd.f32 %v2351_v28, %v2341_v18 }
 0xc95   :  { %2923 = vtanh.f32 %v2352_v24 }
 0xca2   :  { %v2924_v62 = vpop.eup %2923 }
 0xca3   :  { %v2354_v53 = vsub.f32 %v2247_v5, %v2924_v62 }
 0xca5   :  { %v2355_v45 = vmul.f32 %v2354_v53, %v2350_v47 }
 0xca7   :  { %v2356_v56 = vadd.f32 %v2924_v62, %v2355_v45 }
 0xca9   :  { %2753 = vmatmul.mubr.msk.f32.vlgmr.msra.gmra.mxu0 %vm522_vm0, %v2356_v56 }
 0xcaa   :  { %2764 = vmatprep.mubr.msk.f32.mxu0 %vm2999_vm2, %v2998_v23  ;;  %2763 = vmatpush3.msra.mxu0 %v2526_v1 }
 0xd69   :  { %v2437_v39 = vpop.f32.mrf.mxu0 }
 0xd6a   :  { %v2438_v13 = vadd.f32 %v2728_v41, %v2437_v39 }
 0xd6b   :  { %v2754_v34 = vpop.f32.mrf.mxu0 }
 0xd6c   :  { %v2441_v38 = vmax.f32 %v2438_v13, 0.0 }
 0xd6e   :  { %2760 = vmatmul.mubr.msk.f32.vlgmr.msra.gmra.mxu1 %vm2451_vm3, %v2441_v38 }
 0xe2e   :  { %v2521_v57 = vpop.f32.mrf.mxu1 }
 0xe2f   :  { %v2522_v25 = vadd.f32 %v2730_v17, %v2521_v57 }
 0xe30   :  { %v2761_v30 = vpop.f32.mrf.mxu1 }
 0xe31   :  { %v2525_v12 = vmax.f32 %v2522_v25, 0.0 }
 0xe33   :  { %2765 = vmatmul.mubr.msk.f32.vlgmr.msra.gmra.mxu0 %vm2534_vm4, %v2525_v12 }
 0xef3   :  { %v2604_v6 = vpop.f32.mrf.mxu0 }
 0xef4   :  { %v2605_v48 = vadd.f32 %v2732_v32, %v2604_v6 }
 0xef5   :  { %v2766_v37 = vpop.f32.mrf.mxu0 }
 0xef6   :  { %2609 = vst.msk [vmem:[#allocation7] sm:$0x3] %vm2608_vm5, %v2605_v48 }
 0xef7   :  { %2976 = shalt.err (!%p2973_p0)
}
 0xef8   :  { %2619 = dma.vmem_to_hbm [thread:$0]  %s2617_s20, 32, %s3811_s11, [#allocation4]  }
 0xef9   :  { %2989 = dma.done.wait [#allocation4], 32  }
 0xefa   :  { %2990 = vsyncadd [#allocation4], 4294967264 }
 0xefb   :  { %2623 = vsyncpa [#allocation3], 1 }
 0xefc   :  { %2624 = vsyncpa [#allocation6], 1 }
 0xefd   :  { %2625 = vsyncpa [#allocation4], 1 }

</bundles_post_ra>
